<compile_context>
chip_gen: v7x
topology: tpu7x:2x2x1
jax: 0.10.0
libtpu: 0.0.40
codegen_flags: <defaults>
</compile_context>

<pallas_src>
import functools
import math

import jax
import jax.numpy as jnp
from jax import lax
from jax.experimental import pallas as pl
from jax.experimental.pallas import tpu as pltpu

EPS = 1e-6


# ---------------------------------------------------------------- kernel utils
def _layernorm(x, g, b):
    # x: (M, D), g/b: (1, D); eps = 1e-6 like partial(nn.LayerNorm, eps=1e-6)
    mu = jnp.mean(x, axis=-1, keepdims=True)
    xc = x - mu
    var = jnp.mean(xc * xc, axis=-1, keepdims=True)
    return xc * lax.rsqrt(var + EPS) * g + b


def _erf(z):
    # Abramowitz & Stegun 7.1.26 (max abs err ~1.5e-7): exact-GELU semantics
    # without relying on an erf lowering inside Mosaic (only exp/div/select).
    a1, a2, a3, a4, a5 = 0.254829592, -0.284496736, 1.421413741, -1.453152027, 1.061405429
    p = 0.3275911
    sgn = jnp.where(z >= 0.0, 1.0, -1.0)
    za = jnp.abs(z)
    t = 1.0 / (1.0 + p * za)
    poly = ((((a5 * t + a4) * t + a3) * t + a2) * t + a1) * t
    return sgn * (1.0 - poly * jnp.exp(-za * za))


def _gelu_exact(x):
    return 0.5 * x * (1.0 + _erf(x * 0.7071067811865476))  # x/sqrt(2)


# -------------------------------------------------------------- fused kernel
def decoder_kernel(num_heads, seq_valid,
                   x_ref, pos_ref,
                   g1_ref, b1_ref, wqkv_ref, bqkv_ref, wproj_ref, bproj_ref,
                   g2_ref, b2_ref, w1_ref, bm1_ref, w2_ref, bm2_ref,
                   ng_ref, nb_ref,
                   o_ref):
    d = pl.program_id(1)
    nd = pl.num_programs(1)

    # Layer 0: fold in the positional embedding.  o_ref is resident in VMEM for
    # the whole depth loop of this batch block (same block index across d).
    @pl.when(d == 0)
    def _():
        o_ref[...] = x_ref[...] + pos_ref[...]          # (TB,S,D) + (1,S,D)

    TB, Sp, D = o_ref.shape
    M = TB * Sp
    H = num_heads
    dh = D // H
    scale = dh ** -0.5

    # Merge (TB, S) -> M so the big matmuls reuse the streamed weights over the
    # whole batch block (leading-dim reshape only; Sp % 8 == 0 so it is free).
    x = o_ref[...].astype(jnp.float32).reshape(M, D)

    # --------- Attention branch: LN1 -> qkv -> per-head batched attn -> proj
    h = _layernorm(x, g1_ref[0], b1_ref[0])
    qkv = jnp.dot(h.astype(jnp.bfloat16), wqkv_ref[0],
                  preferred_element_type=jnp.float32) + bqkv_ref[0]   # (M, 3D) f32
    q = ((qkv[:, :D] * scale).reshape(TB, Sp, D)).astype(jnp.bfloat16)
    k = (qkv[:, D:2 * D].reshape(TB, Sp, D)).astype(jnp.bfloat16)
    v = (qkv[:, 2 * D:].reshape(TB, Sp, D)).astype(jnp.bfloat16)

    if seq_valid != Sp:   # static: only traced when the wrapper padded S
        kmask = lax.broadcasted_iota(jnp.int32, (1, 1, Sp), 2) < seq_valid
    else:
        kmask = None

    # TODO(synk): fold the head loop into one (TB*H)-batched contraction once the
    # (S,H,dh)<->(H,S,dh) relayout lowering is verified; per-head slices + batched
    # einsum over TB keeps everything on documented-safe dot_general forms.
    head_outs = []
    for hd in range(H):                                  # static unroll (small H)
        sl = slice(hd * dh, (hd + 1) * dh)
        s = jnp.einsum('bqd,bkd->bqk', q[:, :, sl], k[:, :, sl],
                       preferred_element_type=jnp.float32)          # (TB, S, S) f32
        if kmask is not None:
            s = jnp.where(kmask, s, -1e30)               # mask padded keys
        s = s - jnp.max(s, axis=-1, keepdims=True)
        p = jnp.exp(s)
        p = p * pl.reciprocal(jnp.sum(p, axis=-1, keepdims=True), approx=True)
        head_outs.append(jnp.einsum('bqk,bkd->bqd', p.astype(jnp.bfloat16),
                                    v[:, :, sl],
                                    preferred_element_type=jnp.float32))
    attn = jnp.concatenate(head_outs, axis=-1).reshape(M, D)
    attn = jnp.dot(attn.astype(jnp.bfloat16), wproj_ref[0],
                   preferred_element_type=jnp.float32) + bproj_ref[0]
    x = x + attn

    # --------- MLP branch: LN2 -> fc1 -> GELU(exact) -> fc2
    h2 = _layernorm(x, g2_ref[0], b2_ref[0])
    m = jnp.dot(h2.astype(jnp.bfloat16), w1_ref[0],
                preferred_element_type=jnp.float32) + bm1_ref[0]
    m = _gelu_exact(m)                                   # nn.GELU default = erf GELU
    m = jnp.dot(m.astype(jnp.bfloat16), w2_ref[0],
                preferred_element_type=jnp.float32) + bm2_ref[0]
    x = x + m

    @pl.when(d < nd - 1)
    def _():
        o_ref[...] = x.reshape(TB, Sp, D).astype(o_ref.dtype)

    @pl.when(d == nd - 1)
    def _():
        y = _layernorm(x, ng_ref[...], nb_ref[...])
        o_ref[...] = y.reshape(TB, Sp, D).astype(o_ref.dtype)


# ------------------------------------------------------------------ wrapper
def mae_decoder_forward(x, params, *, batch_block=4):
    B, S, D = x.shape
    num_heads = params["num_heads"]
    depth = params["wqkv"].shape[0]
    hidden = params["w1"].shape[-1]
    assert D % 128 == 0 and D % num_heads == 0

    TB = math.gcd(batch_block, B)                        # batch block (divides B)

    # Pad S: sublane multiple always; lane multiple (128) for large S so the
    # (S, S) score matrices are lane-dense (e.g. real MAE S=197 -> 256).
    Sp = ((S + 127) // 128) * 128 if S >= 64 else ((S + 7) // 8) * 8
    if Sp != S:
        x_in = jnp.pad(x, ((0, 0), (0, Sp - S), (0, 0)))
        pos = jnp.pad(params["pos"], ((0, 0), (0, Sp - S), (0, 0)))
    else:
        x_in, pos = x, params["pos"]

    weights = (params["g1"], params["b1"], params["wqkv"], params["bqkv"],
               params["wproj"], params["bproj"], params["g2"], params["b2"],
               params["w1"], params["bm1"], params["w2"], params["bm2"])

    def layer_spec(arr):
        blk = (1,) + arr.shape[1:]
        return pl.BlockSpec(blk, lambda i, d: (d,) + (0,) * (len(blk) - 1))

    in_specs = [pl.BlockSpec((TB, Sp, D), lambda i, d: (i, 0, 0)),   # x (once per batch block)
                pl.BlockSpec((1, Sp, D), lambda i, d: (0, 0, 0))]    # pos
    in_specs += [layer_spec(w) for w in weights]                      # streamed per layer
    in_specs += [pl.BlockSpec((1, D), lambda i, d: (0, 0)),          # final norm gamma
                 pl.BlockSpec((1, D), lambda i, d: (0, 0))]          # final norm beta

    grid_spec = pltpu.PrefetchScalarGridSpec(
        num_scalar_prefetch=0,
        grid=(B // TB, depth),                            # depth innermost: activation resident
        in_specs=in_specs,
        out_specs=pl.BlockSpec((TB, Sp, D), lambda i, d: (i, 0, 0)),
    )

    # Explicit VMEM accounting: double-buffered per-layer weights + activation
    # blocks + f32 intermediates; clamp to 64 MiB (v7x physical limit).
    # TODO(synk): for D >= 1024 split w1/w2 streaming along the hidden axis.
    w_bytes = sum(int(w.size) * w.dtype.itemsize for w in weights) // depth
    act_bytes = TB * Sp * D * 4
    interm = TB * Sp * (3 * D + hidden + 2 * Sp) * 4
    need = 2 * w_bytes + 4 * act_bytes + Sp * D * 4 + interm + (4 << 20)
    vmem_limit = int(min(max(need, 32 << 20), 64 << 20))

    out = pl.pallas_call(
        functools.partial(decoder_kernel, num_heads, S),
        out_shape=jax.ShapeDtypeStruct((B, Sp, D), x.dtype),
        grid_spec=grid_spec,
        input_output_aliases={0: 0},                      # update activations in place
        compiler_params=pltpu.CompilerParams(
            dimension_semantics=("parallel", "arbitrary"),
            vmem_limit_bytes=vmem_limit),
    )(x_in, pos, *weights, params["norm_g"], params["norm_b"])

    return out[:, :S, :] if Sp != S else out


# ------------------------------------------------------- parameter construction
def init_params(key, *, embed_dim, depth, num_heads, mlp_ratio, seq_len):
    hidden = int(embed_dim * mlp_ratio)
    k = jax.random.split(key, 5)
    wdt = jnp.bfloat16   # MXU-operand dtype for the big matmul weights
    params = {
        "num_heads": num_heads,
        "pos": 0.02 * jax.random.normal(k[0], (1, seq_len, embed_dim), jnp.float32),
        "norm_g": jnp.ones((1, embed_dim), jnp.float32),
        "norm_b": jnp.zeros((1, embed_dim), jnp.float32),
        # Per-layer params stacked on a leading depth axis (streamed per grid step).
        "g1": jnp.ones((depth, 1, embed_dim), jnp.float32),
        "b1": jnp.zeros((depth, 1, embed_dim), jnp.float32),
        "wqkv": (0.02 * jax.random.normal(k[1], (depth, embed_dim, 3 * embed_dim),
                                          jnp.float32)).astype(wdt),
        "bqkv": jnp.zeros((depth, 1, 3 * embed_dim), jnp.float32),   # qkv_bias=True
        "wproj": (0.02 * jax.random.normal(k[2], (depth, embed_dim, embed_dim),
                                           jnp.float32)).astype(wdt),
        "bproj": jnp.zeros((depth, 1, embed_dim), jnp.float32),
        "g2": jnp.ones((depth, 1, embed_dim), jnp.float32),
        "b2": jnp.zeros((depth, 1, embed_dim), jnp.float32),
        "w1": (0.02 * jax.random.normal(k[3], (depth, embed_dim, hidden),
                                        jnp.float32)).astype(wdt),
        "bm1": jnp.zeros((depth, 1, hidden), jnp.float32),
        "w2": (0.02 * jax.random.normal(k[4], (depth, hidden, embed_dim),
                                        jnp.float32)).astype(wdt),
        "bm2": jnp.zeros((depth, 1, embed_dim), jnp.float32),
        # NOTE: mask_token exists in __init__ but is only used in forward_masked.
    }
    return params


if __name__ == "__main__":
    # Small config consistent with the module: head_dim = 32 (like 512/16),
    # embed_dim lane-dense (multiple of 128), depth scaled down.
    B, S = 2, 8
    embed_dim, depth, num_heads, mlp_ratio = 128, 2, 4, 4

    key = jax.random.PRNGKey(0)
    kx, kp = jax.random.split(key)
    x = jax.random.normal(kx, (B, S, embed_dim), jnp.float32)
    params = init_params(kp, embed_dim=embed_dim, depth=depth,
                         num_heads=num_heads, mlp_ratio=mlp_ratio, seq_len=S)

    out = mae_decoder_forward(x, params, batch_block=4)   # -> TB = 2 here
    jax.block_until_ready(out)
    assert out.shape == (B, S, embed_dim) and out.dtype == jnp.float32
    assert bool(jnp.all(jnp.isfinite(out)))
    print("KERNEL_OK")
</pallas_src>

<mosaic_0001>
module attributes {stable_mosaic.version = 11 : i64} {
  func.func @decoder_kernel(%arg0: i32, %arg1: i32, %arg2: memref<2x8x128xf32, #tpu.memory_space<vmem>>, %arg3: memref<1x8x128xf32, #tpu.memory_space<vmem>>, %arg4: memref<1x1x128xf32, #tpu.memory_space<vmem>>, %arg5: memref<1x1x128xf32, #tpu.memory_space<vmem>>, %arg6: memref<1x128x384xbf16, #tpu.memory_space<vmem>>, %arg7: memref<1x1x384xf32, #tpu.memory_space<vmem>>, %arg8: memref<1x128x128xbf16, #tpu.memory_space<vmem>>, %arg9: memref<1x1x128xf32, #tpu.memory_space<vmem>>, %arg10: memref<1x1x128xf32, #tpu.memory_space<vmem>>, %arg11: memref<1x1x128xf32, #tpu.memory_space<vmem>>, %arg12: memref<1x128x512xbf16, #tpu.memory_space<vmem>>, %arg13: memref<1x1x512xf32, #tpu.memory_space<vmem>>, %arg14: memref<1x512x128xbf16, #tpu.memory_space<vmem>>, %arg15: memref<1x1x128xf32, #tpu.memory_space<vmem>>, %arg16: memref<1x128xf32, #tpu.memory_space<vmem>>, %arg17: memref<1x128xf32, #tpu.memory_space<vmem>>, %arg18: memref<2x8x128xf32, #tpu.memory_space<vmem>>) attributes {dimension_semantics = [#tpu.dimension_semantics<parallel>, #tpu.dimension_semantics<arbitrary>], iteration_bounds = array<i64: 1, 2>, scalar_prefetch = 0 : i64, scratch_operands = 0 : i64, tpu.core_type = #tpu.core_type<tc>, window_params = [{transform_indices = @transform_0, window_bounds = array<i64: 2, 8, 128>}, {pipeline_mode = #tpu.pipeline_mode<synchronous>, transform_indices = @transform_1, window_bounds = array<i64: 1, 8, 128>}, {transform_indices = @transform_2, window_bounds = array<i64: 1, 1, 128>}, {transform_indices = @transform_3, window_bounds = array<i64: 1, 1, 128>}, {transform_indices = @transform_4, window_bounds = array<i64: 1, 128, 384>}, {transform_indices = @transform_5, window_bounds = array<i64: 1, 1, 384>}, {transform_indices = @transform_6, window_bounds = array<i64: 1, 128, 128>}, {transform_indices = @transform_7, window_bounds = array<i64: 1, 1, 128>}, {transform_indices = @transform_8, window_bounds = array<i64: 1, 1, 128>}, {transform_indices = @transform_9, window_bounds = array<i64: 1, 1, 128>}, {transform_indices = @transform_10, window_bounds = array<i64: 1, 128, 512>}, {transform_indices = @transform_11, window_bounds = array<i64: 1, 1, 512>}, {transform_indices = @transform_12, window_bounds = array<i64: 1, 512, 128>}, {transform_indices = @transform_13, window_bounds = array<i64: 1, 1, 128>}, {pipeline_mode = #tpu.pipeline_mode<synchronous>, transform_indices = @transform_14, window_bounds = array<i64: 1, 128>}, {pipeline_mode = #tpu.pipeline_mode<synchronous>, transform_indices = @transform_15, window_bounds = array<i64: 1, 128>}, {transform_indices = @transform_16, window_bounds = array<i64: 2, 8, 128>}]} {
    %c0_i32 = arith.constant 0 : i32
    %0 = arith.cmpi eq, %arg1, %c0_i32 : i32
    %1 = arith.extui %0 : i1 to i32
    %c0_i32_0 = arith.constant 0 : i32
    %2 = arith.cmpi ne, %1, %c0_i32_0 : i32
    scf.if %2 {
      %c0_88 = arith.constant 0 : index
      %c0_89 = arith.constant 0 : index
      %c0_90 = arith.constant 0 : index
      %211 = vector.load %arg2[%c0_88, %c0_89, %c0_90] : memref<2x8x128xf32, #tpu.memory_space<vmem>>, vector<2x8x128xf32>
      %c0_91 = arith.constant 0 : index
      %c0_92 = arith.constant 0 : index
      %c0_93 = arith.constant 0 : index
      %212 = vector.load %arg3[%c0_91, %c0_92, %c0_93] : memref<1x8x128xf32, #tpu.memory_space<vmem>>, vector<1x8x128xf32>
      %213 = vector.broadcast %212 : vector<1x8x128xf32> to vector<2x8x128xf32>
      %214 = arith.addf %211, %213 : vector<2x8x128xf32>
      %c0_94 = arith.constant 0 : index
      %c0_95 = arith.constant 0 : index
      %c0_96 = arith.constant 0 : index
      %215 = vector.load %arg18[%c0_94, %c0_95, %c0_96] : memref<2x8x128xf32, #tpu.memory_space<vmem>>, vector<2x8x128xf32>
      tpu.vector_store %arg18[%c0_94, %c0_95, %c0_96], %214 {strides = array<i32>} : memref<2x8x128xf32, #tpu.memory_space<vmem>>, vector<2x8x128xf32>,
    } else {
    }
    %c0 = arith.constant 0 : index
    %c0_1 = arith.constant 0 : index
    %c0_2 = arith.constant 0 : index
    %3 = vector.load %arg18[%c0, %c0_1, %c0_2] : memref<2x8x128xf32, #tpu.memory_space<vmem>>, vector<2x8x128xf32>
    %4 = vector.shape_cast %3 : vector<2x8x128xf32> to vector<16x128xf32>
    %c0_3 = arith.constant 0 : index
    %c0_4 = arith.constant 0 : index
    %c0_5 = arith.constant 0 : index
    %5 = vector.load %arg4[%c0_3, %c0_4, %c0_5] : memref<1x1x128xf32, #tpu.memory_space<vmem>>, vector<1x1x128xf32>
    %6 = vector.shape_cast %5 : vector<1x1x128xf32> to vector<1x128xf32>
    %c0_6 = arith.constant 0 : index
    %c0_7 = arith.constant 0 : index
    %c0_8 = arith.constant 0 : index
    %7 = vector.load %arg5[%c0_6, %c0_7, %c0_8] : memref<1x1x128xf32, #tpu.memory_space<vmem>>, vector<1x1x128xf32>
    %8 = vector.shape_cast %7 : vector<1x1x128xf32> to vector<1x128xf32>
    %cst = arith.constant dense<0.000000e+00> : vector<16xf32>
    %9 = vector.multi_reduction <add>, %4, %cst [1] : vector<16x128xf32> to vector<16xf32>
    %10 = vector.shape_cast %9 : vector<16xf32> to vector<16x1xf32>
    %cst_9 = arith.constant 1.280000e+02 : f32
    %11 = vector.broadcast %cst_9 : f32 to vector<16x1xf32>
    %12 = arith.divf %10, %11 : vector<16x1xf32>
    %13 = vector.broadcast %12 : vector<16x1xf32> to vector<16x128xf32>
    %14 = arith.subf %4, %13 : vector<16x128xf32>
    %15 = arith.mulf %14, %14 : vector<16x128xf32>
    %cst_10 = arith.constant dense<0.000000e+00> : vector<16xf32>
    %16 = vector.multi_reduction <add>, %15, %cst_10 [1] : vector<16x128xf32> to vector<16xf32>
    %17 = vector.shape_cast %16 : vector<16xf32> to vector<16x1xf32>
    %cst_11 = arith.constant 1.280000e+02 : f32
    %18 = vector.broadcast %cst_11 : f32 to vector<16x1xf32>
    %19 = arith.divf %17, %18 : vector<16x1xf32>
    %cst_12 = arith.constant 9.99999997E-7 : f32
    %20 = vector.broadcast %cst_12 : f32 to vector<16x1xf32>
    %21 = arith.addf %19, %20 : vector<16x1xf32>
    %22 = math.rsqrt %21 : vector<16x1xf32>
    %23 = vector.broadcast %22 : vector<16x1xf32> to vector<16x128xf32>
    %24 = arith.mulf %14, %23 : vector<16x128xf32>
    %25 = vector.broadcast %6 : vector<1x128xf32> to vector<16x128xf32>
    %26 = arith.mulf %24, %25 : vector<16x128xf32>
    %27 = vector.broadcast %8 : vector<1x128xf32> to vector<16x128xf32>
    %28 = arith.addf %26, %27 : vector<16x128xf32>
    %29 = arith.truncf %28 : vector<16x128xf32> to vector<16x128xbf16>
    %c0_13 = arith.constant 0 : index
    %c0_14 = arith.constant 0 : index
    %c0_15 = arith.constant 0 : index
    %30 = vector.load %arg6[%c0_13, %c0_14, %c0_15] : memref<1x128x384xbf16, #tpu.memory_space<vmem>>, vector<1x128x384xbf16>
    %31 = vector.shape_cast %30 : vector<1x128x384xbf16> to vector<128x384xbf16>
    %cst_16 = arith.constant dense<0.000000e+00> : vector<16x384xf32>
    %32 = tpu.matmul %29, %31, %cst_16 {dimension_numbers = #tpu.dot_dimension_numbers<[1], [0], [0], [1], [0, 0, 1, 1], [], []>} : vector<16x128xbf16>, vector<128x384xbf16>, vector<16x384xf32> -> vector<16x384xf32>
    %c0_17 = arith.constant 0 : index
    %c0_18 = arith.constant 0 : index
    %c0_19 = arith.constant 0 : index
    %33 = vector.load %arg7[%c0_17, %c0_18, %c0_19] : memref<1x1x384xf32, #tpu.memory_space<vmem>>, vector<1x1x384xf32>
    %34 = vector.shape_cast %33 : vector<1x1x384xf32> to vector<1x384xf32>
    %35 = vector.broadcast %34 : vector<1x384xf32> to vector<16x384xf32>
    %36 = arith.addf %32, %35 : vector<16x384xf32>
    %37 = vector.extract_strided_slice %36 {offsets = [0, 0], sizes = [16, 128], strides = [1, 1]} : vector<16x384xf32> to vector<16x128xf32>
    %cst_20 = arith.constant 0.176776692 : f32
    %38 = vector.broadcast %cst_20 : f32 to vector<16x128xf32>
    %39 = arith.mulf %37, %38 : vector<16x128xf32>
    %40 = vector.shape_cast %39 : vector<16x128xf32> to vector<2x8x128xf32>
    %41 = arith.truncf %40 : vector<2x8x128xf32> to vector<2x8x128xbf16>
    %42 = vector.extract_strided_slice %36 {offsets = [0, 128], sizes = [16, 128], strides = [1, 1]} : vector<16x384xf32> to vector<16x128xf32>
    %43 = vector.shape_cast %42 : vector<16x128xf32> to vector<2x8x128xf32>
    %44 = arith.truncf %43 : vector<2x8x128xf32> to vector<2x8x128xbf16>
    %45 = vector.extract_strided_slice %36 {offsets = [0, 256], sizes = [16, 128], strides = [1, 1]} : vector<16x384xf32> to vector<16x128xf32>
    %46 = vector.shape_cast %45 : vector<16x128xf32> to vector<2x8x128xf32>
    %47 = arith.truncf %46 : vector<2x8x128xf32> to vector<2x8x128xbf16>
    %48 = vector.extract_strided_slice %41 {offsets = [0, 0, 0], sizes = [2, 8, 32], strides = [1, 1, 1]} : vector<2x8x128xbf16> to vector<2x8x32xbf16>
    %49 = vector.extract_strided_slice %44 {offsets = [0, 0, 0], sizes = [2, 8, 32], strides = [1, 1, 1]} : vector<2x8x128xbf16> to vector<2x8x32xbf16>
    "tpu.trace_start"() <{level = 10 : i32, message = "bqd,bkd->bqk"}> : () -> ()
    %cst_21 = arith.constant dense<0.000000e+00> : vector<2x8x8xf32>
    %50 = tpu.matmul %48, %49, %cst_21 {dimension_numbers = #tpu.dot_dimension_numbers<[2], [2], [1], [1], [0, 0, 0, 1, 1, 1], [0], [0]>} : vector<2x8x32xbf16>, vector<2x8x32xbf16>, vector<2x8x8xf32> -> vector<2x8x8xf32>
    "tpu.trace_stop"() : () -> ()
    %cst_22 = arith.constant dense<0xFF800000> : vector<2x8xf32>
    %51 = vector.multi_reduction <maximumf>, %50, %cst_22 [2] : vector<2x8x8xf32> to vector<2x8xf32>
    %52 = vector.shape_cast %51 : vector<2x8xf32> to vector<2x8x1xf32>
    %53 = vector.broadcast %52 : vector<2x8x1xf32> to vector<2x8x8xf32>
    %54 = arith.subf %50, %53 : vector<2x8x8xf32>
    %55 = math.exp %54 : vector<2x8x8xf32>
    %cst_23 = arith.constant dense<0.000000e+00> : vector<2x8xf32>
    %56 = vector.multi_reduction <add>, %55, %cst_23 [2] : vector<2x8x8xf32> to vector<2x8xf32>
    %57 = vector.shape_cast %56 : vector<2x8xf32> to vector<2x8x1xf32>
    %58 = tpu.reciprocal %57 {approx = true} : vector<2x8x1xf32> -> vector<2x8x1xf32>
    %59 = vector.broadcast %58 : vector<2x8x1xf32> to vector<2x8x8xf32>
    %60 = arith.mulf %55, %59 : vector<2x8x8xf32>
    %61 = arith.truncf %60 : vector<2x8x8xf32> to vector<2x8x8xbf16>
    %62 = vector.extract_strided_slice %47 {offsets = [0, 0, 0], sizes = [2, 8, 32], strides = [1, 1, 1]} : vector<2x8x128xbf16> to vector<2x8x32xbf16>
    "tpu.trace_start"() <{level = 10 : i32, message = "bqk,bkd->bqd"}> : () -> ()
    %cst_24 = arith.constant dense<0.000000e+00> : vector<2x8x32xf32>
    %63 = tpu.matmul %61, %62, %cst_24 {dimension_numbers = #tpu.dot_dimension_numbers<[2], [1], [1], [2], [0, 0, 0, 1, 1, 2], [0], [0]>} : vector<2x8x8xbf16>, vector<2x8x32xbf16>, vector<2x8x32xf32> -> vector<2x8x32xf32>
    "tpu.trace_stop"() : () -> ()
    %64 = vector.extract_strided_slice %41 {offsets = [0, 0, 32], sizes = [2, 8, 32], strides = [1, 1, 1]} : vector<2x8x128xbf16> to vector<2x8x32xbf16>
    %65 = vector.extract_strided_slice %44 {offsets = [0, 0, 32], sizes = [2, 8, 32], strides = [1, 1, 1]} : vector<2x8x128xbf16> to vector<2x8x32xbf16>
    "tpu.trace_start"() <{level = 10 : i32, message = "bqd,bkd->bqk"}> : () -> ()
    %cst_25 = arith.constant dense<0.000000e+00> : vector<2x8x8xf32>
    %66 = tpu.matmul %64, %65, %cst_25 {dimension_numbers = #tpu.dot_dimension_numbers<[2], [2], [1], [1], [0, 0, 0, 1, 1, 1], [0], [0]>} : vector<2x8x32xbf16>, vector<2x8x32xbf16>, vector<2x8x8xf32> -> vector<2x8x8xf32>
    "tpu.trace_stop"() : () -> ()
    %cst_26 = arith.constant dense<0xFF800000> : vector<2x8xf32>
    %67 = vector.multi_reduction <maximumf>, %66, %cst_26 [2] : vector<2x8x8xf32> to vector<2x8xf32>
    %68 = vector.shape_cast %67 : vector<2x8xf32> to vector<2x8x1xf32>
    %69 = vector.broadcast %68 : vector<2x8x1xf32> to vector<2x8x8xf32>
    %70 = arith.subf %66, %69 : vector<2x8x8xf32>
    %71 = math.exp %70 : vector<2x8x8xf32>
    %cst_27 = arith.constant dense<0.000000e+00> : vector<2x8xf32>
    %72 = vector.multi_reduction <add>, %71, %cst_27 [2] : vector<2x8x8xf32> to vector<2x8xf32>
    %73 = vector.shape_cast %72 : vector<2x8xf32> to vector<2x8x1xf32>
    %74 = tpu.reciprocal %73 {approx = true} : vector<2x8x1xf32> -> vector<2x8x1xf32>
    %75 = vector.broadcast %74 : vector<2x8x1xf32> to vector<2x8x8xf32>
    %76 = arith.mulf %71, %75 : vector<2x8x8xf32>
    %77 = arith.truncf %76 : vector<2x8x8xf32> to vector<2x8x8xbf16>
    %78 = vector.extract_strided_slice %47 {offsets = [0, 0, 32], sizes = [2, 8, 32], strides = [1, 1, 1]} : vector<2x8x128xbf16> to vector<2x8x32xbf16>
    "tpu.trace_start"() <{level = 10 : i32, message = "bqk,bkd->bqd"}> : () -> ()
    %cst_28 = arith.constant dense<0.000000e+00> : vector<2x8x32xf32>
    %79 = tpu.matmul %77, %78, %cst_28 {dimension_numbers = #tpu.dot_dimension_numbers<[2], [1], [1], [2], [0, 0, 0, 1, 1, 2], [0], [0]>} : vector<2x8x8xbf16>, vector<2x8x32xbf16>, vector<2x8x32xf32> -> vector<2x8x32xf32>
    "tpu.trace_stop"() : () -> ()
    %80 = vector.extract_strided_slice %41 {offsets = [0, 0, 64], sizes = [2, 8, 32], strides = [1, 1, 1]} : vector<2x8x128xbf16> to vector<2x8x32xbf16>
    %81 = vector.extract_strided_slice %44 {offsets = [0, 0, 64], sizes = [2, 8, 32], strides = [1, 1, 1]} : vector<2x8x128xbf16> to vector<2x8x32xbf16>
    "tpu.trace_start"() <{level = 10 : i32, message = "bqd,bkd->bqk"}> : () -> ()
    %cst_29 = arith.constant dense<0.000000e+00> : vector<2x8x8xf32>
    %82 = tpu.matmul %80, %81, %cst_29 {dimension_numbers = #tpu.dot_dimension_numbers<[2], [2], [1], [1], [0, 0, 0, 1, 1, 1], [0], [0]>} : vector<2x8x32xbf16>, vector<2x8x32xbf16>, vector<2x8x8xf32> -> vector<2x8x8xf32>
    "tpu.trace_stop"() : () -> ()
    %cst_30 = arith.constant dense<0xFF800000> : vector<2x8xf32>
    %83 = vector.multi_reduction <maximumf>, %82, %cst_30 [2] : vector<2x8x8xf32> to vector<2x8xf32>
    %84 = vector.shape_cast %83 : vector<2x8xf32> to vector<2x8x1xf32>
    %85 = vector.broadcast %84 : vector<2x8x1xf32> to vector<2x8x8xf32>
    %86 = arith.subf %82, %85 : vector<2x8x8xf32>
    %87 = math.exp %86 : vector<2x8x8xf32>
    %cst_31 = arith.constant dense<0.000000e+00> : vector<2x8xf32>
    %88 = vector.multi_reduction <add>, %87, %cst_31 [2] : vector<2x8x8xf32> to vector<2x8xf32>
    %89 = vector.shape_cast %88 : vector<2x8xf32> to vector<2x8x1xf32>
    %90 = tpu.reciprocal %89 {approx = true} : vector<2x8x1xf32> -> vector<2x8x1xf32>
    %91 = vector.broadcast %90 : vector<2x8x1xf32> to vector<2x8x8xf32>
    %92 = arith.mulf %87, %91 : vector<2x8x8xf32>
    %93 = arith.truncf %92 : vector<2x8x8xf32> to vector<2x8x8xbf16>
    %94 = vector.extract_strided_slice %47 {offsets = [0, 0, 64], sizes = [2, 8, 32], strides = [1, 1, 1]} : vector<2x8x128xbf16> to vector<2x8x32xbf16>
    "tpu.trace_start"() <{level = 10 : i32, message = "bqk,bkd->bqd"}> : () -> ()
    %cst_32 = arith.constant dense<0.000000e+00> : vector<2x8x32xf32>
    %95 = tpu.matmul %93, %94, %cst_32 {dimension_numbers = #tpu.dot_dimension_numbers<[2], [1], [1], [2], [0, 0, 0, 1, 1, 2], [0], [0]>} : vector<2x8x8xbf16>, vector<2x8x32xbf16>, vector<2x8x32xf32> -> vector<2x8x32xf32>
    "tpu.trace_stop"() : () -> ()
    %96 = vector.extract_strided_slice %41 {offsets = [0, 0, 96], sizes = [2, 8, 32], strides = [1, 1, 1]} : vector<2x8x128xbf16> to vector<2x8x32xbf16>
    %97 = vector.extract_strided_slice %44 {offsets = [0, 0, 96], sizes = [2, 8, 32], strides = [1, 1, 1]} : vector<2x8x128xbf16> to vector<2x8x32xbf16>
    "tpu.trace_start"() <{level = 10 : i32, message = "bqd,bkd->bqk"}> : () -> ()
    %cst_33 = arith.constant dense<0.000000e+00> : vector<2x8x8xf32>
    %98 = tpu.matmul %96, %97, %cst_33 {dimension_numbers = #tpu.dot_dimension_numbers<[2], [2], [1], [1], [0, 0, 0, 1, 1, 1], [0], [0]>} : vector<2x8x32xbf16>, vector<2x8x32xbf16>, vector<2x8x8xf32> -> vector<2x8x8xf32>
    "tpu.trace_stop"() : () -> ()
    %cst_34 = arith.constant dense<0xFF800000> : vector<2x8xf32>
    %99 = vector.multi_reduction <maximumf>, %98, %cst_34 [2] : vector<2x8x8xf32> to vector<2x8xf32>
    %100 = vector.shape_cast %99 : vector<2x8xf32> to vector<2x8x1xf32>
    %101 = vector.broadcast %100 : vector<2x8x1xf32> to vector<2x8x8xf32>
    %102 = arith.subf %98, %101 : vector<2x8x8xf32>
    %103 = math.exp %102 : vector<2x8x8xf32>
    %cst_35 = arith.constant dense<0.000000e+00> : vector<2x8xf32>
    %104 = vector.multi_reduction <add>, %103, %cst_35 [2] : vector<2x8x8xf32> to vector<2x8xf32>
    %105 = vector.shape_cast %104 : vector<2x8xf32> to vector<2x8x1xf32>
    %106 = tpu.reciprocal %105 {approx = true} : vector<2x8x1xf32> -> vector<2x8x1xf32>
    %107 = vector.broadcast %106 : vector<2x8x1xf32> to vector<2x8x8xf32>
    %108 = arith.mulf %103, %107 : vector<2x8x8xf32>
    %109 = arith.truncf %108 : vector<2x8x8xf32> to vector<2x8x8xbf16>
    %110 = vector.extract_strided_slice %47 {offsets = [0, 0, 96], sizes = [2, 8, 32], strides = [1, 1, 1]} : vector<2x8x128xbf16> to vector<2x8x32xbf16>
    "tpu.trace_start"() <{level = 10 : i32, message = "bqk,bkd->bqd"}> : () -> ()
    %cst_36 = arith.constant dense<0.000000e+00> : vector<2x8x32xf32>
    %111 = tpu.matmul %109, %110, %cst_36 {dimension_numbers = #tpu.dot_dimension_numbers<[2], [1], [1], [2], [0, 0, 0, 1, 1, 2], [0], [0]>} : vector<2x8x8xbf16>, vector<2x8x32xbf16>, vector<2x8x32xf32> -> vector<2x8x32xf32>
    "tpu.trace_stop"() : () -> ()
    %112 = tpu.concatenate %63, %79, %95, %111 in 2 : vector<2x8x32xf32>, vector<2x8x32xf32>, vector<2x8x32xf32>, vector<2x8x32xf32> -> vector<2x8x128xf32>
    %113 = vector.shape_cast %112 : vector<2x8x128xf32> to vector<16x128xf32>
    %114 = arith.truncf %113 : vector<16x128xf32> to vector<16x128xbf16>
    %c0_37 = arith.constant 0 : index
    %c0_38 = arith.constant 0 : index
    %c0_39 = arith.constant 0 : index
    %115 = vector.load %arg8[%c0_37, %c0_38, %c0_39] : memref<1x128x128xbf16, #tpu.memory_space<vmem>>, vector<1x128x128xbf16>
    %116 = vector.shape_cast %115 : vector<1x128x128xbf16> to vector<128x128xbf16>
    %cst_40 = arith.constant dense<0.000000e+00> : vector<16x128xf32>
    %117 = tpu.matmul %114, %116, %cst_40 {dimension_numbers = #tpu.dot_dimension_numbers<[1], [0], [0], [1], [0, 0, 1, 1], [], []>} : vector<16x128xbf16>, vector<128x128xbf16>, vector<16x128xf32> -> vector<16x128xf32>
    %c0_41 = arith.constant 0 : index
    %c0_42 = arith.constant 0 : index
    %c0_43 = arith.constant 0 : index
    %118 = vector.load %arg9[%c0_41, %c0_42, %c0_43] : memref<1x1x128xf32, #tpu.memory_space<vmem>>, vector<1x1x128xf32>
    %119 = vector.shape_cast %118 : vector<1x1x128xf32> to vector<1x128xf32>
    %120 = vector.broadcast %119 : vector<1x128xf32> to vector<16x128xf32>
    %121 = arith.addf %117, %120 : vector<16x128xf32>
    %122 = arith.addf %4, %121 : vector<16x128xf32>
    %c0_44 = arith.constant 0 : index
    %c0_45 = arith.constant 0 : index
    %c0_46 = arith.constant 0 : index
    %123 = vector.load %arg10[%c0_44, %c0_45, %c0_46] : memref<1x1x128xf32, #tpu.memory_space<vmem>>, vector<1x1x128xf32>
    %124 = vector.shape_cast %123 : vector<1x1x128xf32> to vector<1x128xf32>
    %c0_47 = arith.constant 0 : index
    %c0_48 = arith.constant 0 : index
    %c0_49 = arith.constant 0 : index
    %125 = vector.load %arg11[%c0_47, %c0_48, %c0_49] : memref<1x1x128xf32, #tpu.memory_space<vmem>>, vector<1x1x128xf32>
    %126 = vector.shape_cast %125 : vector<1x1x128xf32> to vector<1x128xf32>
    %cst_50 = arith.constant dense<0.000000e+00> : vector<16xf32>
    %127 = vector.multi_reduction <add>, %122, %cst_50 [1] : vector<16x128xf32> to vector<16xf32>
    %128 = vector.shape_cast %127 : vector<16xf32> to vector<16x1xf32>
    %cst_51 = arith.constant 1.280000e+02 : f32
    %129 = vector.broadcast %cst_51 : f32 to vector<16x1xf32>
    %130 = arith.divf %128, %129 : vector<16x1xf32>
    %131 = vector.broadcast %130 : vector<16x1xf32> to vector<16x128xf32>
    %132 = arith.subf %122, %131 : vector<16x128xf32>
    %133 = arith.mulf %132, %132 : vector<16x128xf32>
    %cst_52 = arith.constant dense<0.000000e+00> : vector<16xf32>
    %134 = vector.multi_reduction <add>, %133, %cst_52 [1] : vector<16x128xf32> to vector<16xf32>
    %135 = vector.shape_cast %134 : vector<16xf32> to vector<16x1xf32>
    %cst_53 = arith.constant 1.280000e+02 : f32
    %136 = vector.broadcast %cst_53 : f32 to vector<16x1xf32>
    %137 = arith.divf %135, %136 : vector<16x1xf32>
    %cst_54 = arith.constant 9.99999997E-7 : f32
    %138 = vector.broadcast %cst_54 : f32 to vector<16x1xf32>
    %139 = arith.addf %137, %138 : vector<16x1xf32>
    %140 = math.rsqrt %139 : vector<16x1xf32>
    %141 = vector.broadcast %140 : vector<16x1xf32> to vector<16x128xf32>
    %142 = arith.mulf %132, %141 : vector<16x128xf32>
    %143 = vector.broadcast %124 : vector<1x128xf32> to vector<16x128xf32>
    %144 = arith.mulf %142, %143 : vector<16x128xf32>
    %145 = vector.broadcast %126 : vector<1x128xf32> to vector<16x128xf32>
    %146 = arith.addf %144, %145 : vector<16x128xf32>
    %147 = arith.truncf %146 : vector<16x128xf32> to vector<16x128xbf16>
    %c0_55 = arith.constant 0 : index
    %c0_56 = arith.constant 0 : index
    %c0_57 = arith.constant 0 : index
    %148 = vector.load %arg12[%c0_55, %c0_56, %c0_57] : memref<1x128x512xbf16, #tpu.memory_space<vmem>>, vector<1x128x512xbf16>
    %149 = vector.shape_cast %148 : vector<1x128x512xbf16> to vector<128x512xbf16>
    %cst_58 = arith.constant dense<0.000000e+00> : vector<16x512xf32>
    %150 = tpu.matmul %147, %149, %cst_58 {dimension_numbers = #tpu.dot_dimension_numbers<[1], [0], [0], [1], [0, 0, 1, 1], [], []>} : vector<16x128xbf16>, vector<128x512xbf16>, vector<16x512xf32> -> vector<16x512xf32>
    %c0_59 = arith.constant 0 : index
    %c0_60 = arith.constant 0 : index
    %c0_61 = arith.constant 0 : index
    %151 = vector.load %arg13[%c0_59, %c0_60, %c0_61] : memref<1x1x512xf32, #tpu.memory_space<vmem>>, vector<1x1x512xf32>
    %152 = vector.shape_cast %151 : vector<1x1x512xf32> to vector<1x512xf32>
    %153 = vector.broadcast %152 : vector<1x512xf32> to vector<16x512xf32>
    %154 = arith.addf %150, %153 : vector<16x512xf32>
    %cst_62 = arith.constant 5.000000e-01 : f32
    %155 = vector.broadcast %cst_62 : f32 to vector<16x512xf32>
    %156 = arith.mulf %155, %154 : vector<16x512xf32>
    %cst_63 = arith.constant 0.707106769 : f32
    %157 = vector.broadcast %cst_63 : f32 to vector<16x512xf32>
    %158 = arith.mulf %154, %157 : vector<16x512xf32>
    %cst_64 = arith.constant 0.000000e+00 : f32
    %159 = vector.broadcast %cst_64 : f32 to vector<16x512xf32>
    %160 = arith.cmpf oge, %158, %159 : vector<16x512xf32>
    %cst_65 = arith.constant 1.000000e+00 : f32
    %cst_66 = arith.constant -1.000000e+00 : f32
    %161 = vector.broadcast %cst_65 : f32 to vector<16x512xf32>
    %162 = vector.broadcast %cst_66 : f32 to vector<16x512xf32>
    %163 = arith.select %160, %161, %162 : vector<16x512xi1>, vector<16x512xf32>
    %164 = math.absf %158 : vector<16x512xf32>
    %cst_67 = arith.constant 0.327591091 : f32
    %165 = vector.broadcast %cst_67 : f32 to vector<16x512xf32>
    %166 = arith.mulf %165, %164 : vector<16x512xf32>
    %cst_68 = arith.constant 1.000000e+00 : f32
    %167 = vector.broadcast %cst_68 : f32 to vector<16x512xf32>
    %168 = arith.addf %167, %166 : vector<16x512xf32>
    %cst_69 = arith.constant 1.000000e+00 : f32
    %169 = vector.broadcast %cst_69 : f32 to vector<16x512xf32>
    %170 = arith.divf %169, %168 : vector<16x512xf32>
    %cst_70 = arith.constant 1.06140542 : f32
    %171 = vector.broadcast %cst_70 : f32 to vector<16x512xf32>
    %172 = arith.mulf %171, %170 : vector<16x512xf32>
    %cst_71 = arith.constant -1.45315206 : f32
    %173 = vector.broadcast %cst_71 : f32 to vector<16x512xf32>
    %174 = arith.addf %172, %173 : vector<16x512xf32>
    %175 = arith.mulf %174, %170 : vector<16x512xf32>
    %cst_72 = arith.constant 1.42141378 : f32
    %176 = vector.broadcast %cst_72 : f32 to vector<16x512xf32>
    %177 = arith.addf %175, %176 : vector<16x512xf32>
    %178 = arith.mulf %177, %170 : vector<16x512xf32>
    %cst_73 = arith.constant -0.284496725 : f32
    %179 = vector.broadcast %cst_73 : f32 to vector<16x512xf32>
    %180 = arith.addf %178, %179 : vector<16x512xf32>
    %181 = arith.mulf %180, %170 : vector<16x512xf32>
    %cst_74 = arith.constant 0.254829586 : f32
    %182 = vector.broadcast %cst_74 : f32 to vector<16x512xf32>
    %183 = arith.addf %181, %182 : vector<16x512xf32>
    %184 = arith.mulf %183, %170 : vector<16x512xf32>
    %cst_75 = arith.constant 0.000000e+00 : f32
    %185 = vector.broadcast %cst_75 : f32 to vector<16x512xf32>
    %186 = arith.subf %185, %164 : vector<16x512xf32>
    %187 = arith.mulf %186, %164 : vector<16x512xf32>
    %188 = math.exp %187 : vector<16x512xf32>
    %189 = arith.mulf %184, %188 : vector<16x512xf32>
    %cst_76 = arith.constant 1.000000e+00 : f32
    %190 = vector.broadcast %cst_76 : f32 to vector<16x512xf32>
    %191 = arith.subf %190, %189 : vector<16x512xf32>
    %192 = arith.mulf %163, %191 : vector<16x512xf32>
    %cst_77 = arith.constant 1.000000e+00 : f32
    %193 = vector.broadcast %cst_77 : f32 to vector<16x512xf32>
    %194 = arith.addf %193, %192 : vector<16x512xf32>
    %195 = arith.mulf %156, %194 : vector<16x512xf32>
    %196 = arith.truncf %195 : vector<16x512xf32> to vector<16x512xbf16>
    %c0_78 = arith.constant 0 : index
    %c0_79 = arith.constant 0 : index
    %c0_80 = arith.constant 0 : index
    %197 = vector.load %arg14[%c0_78, %c0_79, %c0_80] : memref<1x512x128xbf16, #tpu.memory_space<vmem>>, vector<1x512x128xbf16>
    %198 = vector.shape_cast %197 : vector<1x512x128xbf16> to vector<512x128xbf16>
    %cst_81 = arith.constant dense<0.000000e+00> : vector<16x128xf32>
    %199 = tpu.matmul %196, %198, %cst_81 {dimension_numbers = #tpu.dot_dimension_numbers<[1], [0], [0], [1], [0, 0, 1, 1], [], []>} : vector<16x512xbf16>, vector<512x128xbf16>, vector<16x128xf32> -> vector<16x128xf32>
    %c0_82 = arith.constant 0 : index
    %c0_83 = arith.constant 0 : index
    %c0_84 = arith.constant 0 : index
    %200 = vector.load %arg15[%c0_82, %c0_83, %c0_84] : memref<1x1x128xf32, #tpu.memory_space<vmem>>, vector<1x1x128xf32>
    %201 = vector.shape_cast %200 : vector<1x1x128xf32> to vector<1x128xf32>
    %202 = vector.broadcast %201 : vector<1x128xf32> to vector<16x128xf32>
    %203 = arith.addf %199, %202 : vector<16x128xf32>
    %204 = arith.addf %122, %203 : vector<16x128xf32>
    %c1_i32 = arith.constant 1 : i32
    %205 = arith.cmpi slt, %arg1, %c1_i32 : i32
    %206 = arith.extui %205 : i1 to i32
    %c0_i32_85 = arith.constant 0 : i32
    %207 = arith.cmpi ne, %206, %c0_i32_85 : i32
    scf.if %207 {
      %211 = vector.shape_cast %204 : vector<16x128xf32> to vector<2x8x128xf32>
      %c0_88 = arith.constant 0 : index
      %c0_89 = arith.constant 0 : index
      %c0_90 = arith.constant 0 : index
      %212 = vector.load %arg18[%c0_88, %c0_89, %c0_90] : memref<2x8x128xf32, #tpu.memory_space<vmem>>, vector<2x8x128xf32>
      tpu.vector_store %arg18[%c0_88, %c0_89, %c0_90], %211 {strides = array<i32>} : memref<2x8x128xf32, #tpu.memory_space<vmem>>, vector<2x8x128xf32>,
    } else {
    }
    %c1_i32_86 = arith.constant 1 : i32
    %208 = arith.cmpi eq, %arg1, %c1_i32_86 : i32
    %209 = arith.extui %208 : i1 to i32
    %c0_i32_87 = arith.constant 0 : i32
    %210 = arith.cmpi ne, %209, %c0_i32_87 : i32
    scf.if %210 {
      %c0_88 = arith.constant 0 : index
      %c0_89 = arith.constant 0 : index
      %211 = vector.load %arg16[%c0_88, %c0_89] : memref<1x128xf32, #tpu.memory_space<vmem>>, vector<1x128xf32>
      %c0_90 = arith.constant 0 : index
      %c0_91 = arith.constant 0 : index
      %212 = vector.load %arg17[%c0_90, %c0_91] : memref<1x128xf32, #tpu.memory_space<vmem>>, vector<1x128xf32>
      %cst_92 = arith.constant dense<0.000000e+00> : vector<16xf32>
      %213 = vector.multi_reduction <add>, %204, %cst_92 [1] : vector<16x128xf32> to vector<16xf32>
      %214 = vector.shape_cast %213 : vector<16xf32> to vector<16x1xf32>
      %cst_93 = arith.constant 1.280000e+02 : f32
      %215 = vector.broadcast %cst_93 : f32 to vector<16x1xf32>
      %216 = arith.divf %214, %215 : vector<16x1xf32>
      %217 = vector.broadcast %216 : vector<16x1xf32> to vector<16x128xf32>
      %218 = arith.subf %204, %217 : vector<16x128xf32>
      %219 = arith.mulf %218, %218 : vector<16x128xf32>
      %cst_94 = arith.constant dense<0.000000e+00> : vector<16xf32>
      %220 = vector.multi_reduction <add>, %219, %cst_94 [1] : vector<16x128xf32> to vector<16xf32>
      %221 = vector.shape_cast %220 : vector<16xf32> to vector<16x1xf32>
      %cst_95 = arith.constant 1.280000e+02 : f32
      %222 = vector.broadcast %cst_95 : f32 to vector<16x1xf32>
      %223 = arith.divf %221, %222 : vector<16x1xf32>
      %cst_96 = arith.constant 9.99999997E-7 : f32
      %224 = vector.broadcast %cst_96 : f32 to vector<16x1xf32>
      %225 = arith.addf %223, %224 : vector<16x1xf32>
      %226 = math.rsqrt %225 : vector<16x1xf32>
      %227 = vector.broadcast %226 : vector<16x1xf32> to vector<16x128xf32>
      %228 = arith.mulf %218, %227 : vector<16x128xf32>
      %229 = vector.broadcast %211 : vector<1x128xf32> to vector<16x128xf32>
      %230 = arith.mulf %228, %229 : vector<16x128xf32>
      %231 = vector.broadcast %212 : vector<1x128xf32> to vector<16x128xf32>
      %232 = arith.addf %230, %231 : vector<16x128xf32>
      %233 = vector.shape_cast %232 : vector<16x128xf32> to vector<2x8x128xf32>
      %c0_97 = arith.constant 0 : index
      %c0_98 = arith.constant 0 : index
      %c0_99 = arith.constant 0 : index
      %234 = vector.load %arg18[%c0_97, %c0_98, %c0_99] : memref<2x8x128xf32, #tpu.memory_space<vmem>>, vector<2x8x128xf32>
      tpu.vector_store %arg18[%c0_97, %c0_98, %c0_99], %233 {strides = array<i32>} : memref<2x8x128xf32, #tpu.memory_space<vmem>>, vector<2x8x128xf32>,
    } else {
    }
    return
  }
  func.func @transform_0(%arg0: i32, %arg1: i32) -> (i32, i32, i32) {
    %c0_i32 = arith.constant 0 : i32
    %c0_i32_0 = arith.constant 0 : i32
    %c0_i32_1 = arith.constant 0 : i32
    return %arg0, %c0_i32, %c0_i32_0 : i32, i32, i32
  }
  func.func @transform_1(%arg0: i32, %arg1: i32) -> (i32, i32, i32) {
    %c0_i32 = arith.constant 0 : i32
    %c0_i32_0 = arith.constant 0 : i32
    %c0_i32_1 = arith.constant 0 : i32
    %c0_i32_2 = arith.constant 0 : i32
    return %c0_i32, %c0_i32_0, %c0_i32_1 : i32, i32, i32
  }
  func.func @transform_2(%arg0: i32, %arg1: i32) -> (i32, i32, i32) {
    %c0_i32 = arith.constant 0 : i32
    %c0_i32_0 = arith.constant 0 : i32
    %c0_i32_1 = arith.constant 0 : i32
    return %arg1, %c0_i32, %c0_i32_0 : i32, i32, i32
  }
  func.func @transform_3(%arg0: i32, %arg1: i32) -> (i32, i32, i32) {
    %c0_i32 = arith.constant 0 : i32
    %c0_i32_0 = arith.constant 0 : i32
    %c0_i32_1 = arith.constant 0 : i32
    return %arg1, %c0_i32, %c0_i32_0 : i32, i32, i32
  }
  func.func @transform_4(%arg0: i32, %arg1: i32) -> (i32, i32, i32) {
    %c0_i32 = arith.constant 0 : i32
    %c0_i32_0 = arith.constant 0 : i32
    %c0_i32_1 = arith.constant 0 : i32
    return %arg1, %c0_i32, %c0_i32_0 : i32, i32, i32
  }
  func.func @transform_5(%arg0: i32, %arg1: i32) -> (i32, i32, i32) {
    %c0_i32 = arith.constant 0 : i32
    %c0_i32_0 = arith.constant 0 : i32
    %c0_i32_1 = arith.constant 0 : i32
    return %arg1, %c0_i32, %c0_i32_0 : i32, i32, i32
  }
  func.func @transform_6(%arg0: i32, %arg1: i32) -> (i32, i32, i32) {
    %c0_i32 = arith.constant 0 : i32
    %c0_i32_0 = arith.constant 0 : i32
    %c0_i32_1 = arith.constant 0 : i32
    return %arg1, %c0_i32, %c0_i32_0 : i32, i32, i32
  }
  func.func @transform_7(%arg0: i32, %arg1: i32) -> (i32, i32, i32) {
    %c0_i32 = arith.constant 0 : i32
    %c0_i32_0 = arith.constant 0 : i32
    %c0_i32_1 = arith.constant 0 : i32
    return %arg1, %c0_i32, %c0_i32_0 : i32, i32, i32
  }
  func.func @transform_8(%arg0: i32, %arg1: i32) -> (i32, i32, i32) {
    %c0_i32 = arith.constant 0 : i32
    %c0_i32_0 = arith.constant 0 : i32
    %c0_i32_1 = arith.constant 0 : i32
    return %arg1, %c0_i32, %c0_i32_0 : i32, i32, i32
  }
  func.func @transform_9(%arg0: i32, %arg1: i32) -> (i32, i32, i32) {
    %c0_i32 = arith.constant 0 : i32
    %c0_i32_0 = arith.constant 0 : i32
    %c0_i32_1 = arith.constant 0 : i32
    return %arg1, %c0_i32, %c0_i32_0 : i32, i32, i32
  }
  func.func @transform_10(%arg0: i32, %arg1: i32) -> (i32, i32, i32) {
    %c0_i32 = arith.constant 0 : i32
    %c0_i32_0 = arith.constant 0 : i32
    %c0_i32_1 = arith.constant 0 : i32
    return %arg1, %c0_i32, %c0_i32_0 : i32, i32, i32
  }
  func.func @transform_11(%arg0: i32, %arg1: i32) -> (i32, i32, i32) {
    %c0_i32 = arith.constant 0 : i32
    %c0_i32_0 = arith.constant 0 : i32
    %c0_i32_1 = arith.constant 0 : i32
    return %arg1, %c0_i32, %c0_i32_0 : i32, i32, i32
  }
  func.func @transform_12(%arg0: i32, %arg1: i32) -> (i32, i32, i32) {
    %c0_i32 = arith.constant 0 : i32
    %c0_i32_0 = arith.constant 0 : i32
    %c0_i32_1 = arith.constant 0 : i32
    return %arg1, %c0_i32, %c0_i32_0 : i32, i32, i32
  }
  func.func @transform_13(%arg0: i32, %arg1: i32) -> (i32, i32, i32) {
    %c0_i32 = arith.constant 0 : i32
    %c0_i32_0 = arith.constant 0 : i32
    %c0_i32_1 = arith.constant 0 : i32
    return %arg1, %c0_i32, %c0_i32_0 : i32, i32, i32
  }
  func.func @transform_14(%arg0: i32, %arg1: i32) -> (i32, i32) {
    %c0_i32 = arith.constant 0 : i32
    %c0_i32_0 = arith.constant 0 : i32
    %c0_i32_1 = arith.constant 0 : i32
    return %c0_i32, %c0_i32_0 : i32, i32
  }
  func.func @transform_15(%arg0: i32, %arg1: i32) -> (i32, i32) {
    %c0_i32 = arith.constant 0 : i32
    %c0_i32_0 = arith.constant 0 : i32
    %c0_i32_1 = arith.constant 0 : i32
    return %c0_i32, %c0_i32_0 : i32, i32
  }
  func.func @transform_16(%arg0: i32, %arg1: i32) -> (i32, i32, i32) {
    %c0_i32 = arith.constant 0 : i32
    %c0_i32_0 = arith.constant 0 : i32
    %c0_i32_1 = arith.constant 0 : i32
    return %arg0, %c0_i32, %c0_i32_0 : i32, i32, i32
  }
}

</mosaic_0001>

<bundles_post_ra>
// kernel: tpu_custom_call.1
= control target key start
LH: loop header
LB: loop body
LE: loop exit
PB: predicated region body
PF: predicated region fallthrough
CT: control target
= control target key end

     0   :  { %s5269_s0 = inlined_call_operand.hbm [shape: f32[2,8,128], index: 0, kind: input, shape index: {}, may-alias: {0,16}]   ;;  %s5270_s1 = inlined_call_operand.vmem [shape: f32[1,8,128], index: 1, kind: input, shape index: {}]   ;;  %s5271_s2 = inlined_call_operand.vmem [shape: f32[2,1,128], index: 2, kind: input, shape index: {}]   ;;  %s5272_s3 = inlined_call_operand.vmem [shape: f32[2,1,128], index: 3, kind: input, shape index: {}]   ;;  %s5273_s4 = inlined_call_operand.hbm [shape: bf16[2,128,384], index: 4, kind: input, shape index: {}]   ;;  %s5274_s5 = inlined_call_operand.vmem [shape: f32[2,1,384], index: 5, kind: input, shape index: {}]   ;;  %s5275_s6 = inlined_call_operand.hbm [shape: bf16[2,128,128], index: 6, kind: input, shape index: {}]   ;;  %s5276_s7 = inlined_call_operand.vmem [shape: f32[2,1,128], index: 7, kind: input, shape index: {}]   ;;  %s5277_s8 = inlined_call_operand.vmem [shape: f32[2,1,128], index: 8, kind: input, shape index: {}]   ;;  %s5278_s9 = inlined_call_operand.vmem [shape: f32[2,1,128], index: 9, kind: input, shape index: {}]   ;;  %s5279_s10 = inlined_call_operand.hbm [shape: bf16[2,128,512], index: 10, kind: input, shape index: {}]   ;;  %s5280_s11 = inlined_call_operand.vmem [shape: f32[2,1,512], index: 11, kind: input, shape index: {}]   ;;  %s5281_s12 = inlined_call_operand.hbm [shape: bf16[2,512,128], index: 12, kind: input, shape index: {}]   ;;  %s5282_s13 = inlined_call_operand.vmem [shape: f32[2,1,128], index: 13, kind: input, shape index: {}]   ;;  %s5283_s14 = inlined_call_operand.vmem [shape: f32[1,128], index: 14, kind: input, shape index: {}]   ;;  %s5284_s15 = inlined_call_operand.vmem [shape: f32[1,128], index: 15, kind: input, shape index: {}]   ;;  %s5285_s16 = inlined_call_operand.hbm [shape: f32[2,8,128], index: 16, kind: output, shape index: {}, may-alias: {0,16}]  }
   0x1   :  { %5301 = sst [smem:[#allocation22_spill]] %s5269_s0 }
   0x2   :  { %5302 = sst [smem:[#allocation23_spill]] %s5270_s1 }
   0x3   :  { %5303 = sst [smem:[#allocation24_spill]] %s5273_s4 }
   0x4   :  { %5304 = sst [smem:[#allocation25_spill]] %s5274_s5 }
   0x5   :  { %5305 = sst [smem:[#allocation26_spill]] %s5275_s6 }
   0x6   :  { %5306 = sst [smem:[#allocation27_spill]] %s5277_s8 }
   0x7   :  { %5307 = sst [smem:[#allocation28_spill]] %s5278_s9 }
   0x8   :  { %5308 = sst [smem:[#allocation29_spill]] %s5279_s10 }
   0x9   :  { %5309 = sst [smem:[#allocation30_spill]] %s5280_s11 }
   0xa   :  { %5310 = sst [smem:[#allocation31_spill]] %s5281_s12 }
   0xb   :  { %5311 = sst [smem:[#allocation32_spill]] %s5282_s13 }
   0xc   :  { %5312 = sst [smem:[#allocation33_spill]] %s5283_s14 }
   0xd   :  { %5313 = sst [smem:[#allocation34_spill]] %s5284_s15 }
   0xe   :  { %5314 = sst [smem:[#allocation35_spill]] %s5285_s16 }
   0xf   :  { %21 = vsyncpa [#allocation3], 0 }
  0x10   :  { %22 = vsyncpa [#allocation6], 0 }
  0x11   :  { %24 = vsyncpa [#allocation6 + $0x1], 0 }
  0x12   :  { %25 = vsyncpa [#allocation9], 0 }
  0x13   :  { %27 = vsyncpa [#allocation9 + $0x1], 0 }
  0x14   :  { %28 = vsyncpa [#allocation4], 0  ;;  %s4387_s21 = smov 0   ;;  %s4389_s22 = smov 0  }
  0x15   :  { %s4391_s23 = smov 0   ;;  %s4393_s24 = smov 0  }
  0x16   :  { %s4395_s25 = smov 0   ;;  %s4397_s26 = smov 0  }
  0x17 LB: > { %5315 = sst [smem:[#allocation16_spill]] %s4261_s22  ;;  %s43_s27 = sadd.s32 1, %s4273_s25  ;;  %s4277_s26 = sphi %s4397_s26, %s34_s26   ;;  %s4273_s25 = sphi %s4395_s25, %s5359_s25   ;;  %s4269_s24 = sphi %s4393_s24, %s5358_s24   ;;  %s4265_s23 = sphi %s4391_s23, %s5357_s23   ;;  %s4261_s22 = sphi %s4389_s22, %s5356_s22   ;;  %s4257_s21 = sphi %s4387_s21, %s5355_s21  }
  0x18   : > { %5316 = sst [smem:[#allocation17_spill]] %s4265_s23  ;;  %s152_s28 = sadd.s32 1, %s4265_s23 }
  0x19   : > { %5317 = sst [smem:[#allocation18_spill]] %s4273_s25  ;;  %p44_p0 = scmp.ge.s32.totalorder %s43_s27, 2 }
  0x1a   : > { %5318 = sst [smem:[#allocation19_spill]] %s4277_s26  ;;  %p159_p1 = scmp.ne.s32.totalorder %s4265_s23, %s4261_s22 }
  0x1b   : > { %p160_p2 = scmp.eq.s32.totalorder %s4277_s26, 0  ;;  %s5361_s27 = smov (%p44_p0, %s43_s27), 0 }
  0x1c   : > { %5319 = sst [smem:[#allocation20_spill]] %s5361_s27  ;;  %p3757_p4 = scmp.lt.s32.totalorder %s4277_s26, 2 }
  0x1d   : > { %p161_p3 = por %p160_p2, %p159_p1  ;;  %s149_s29 = ssub.s32 %s4273_s25, %s5361_s27 }
  0x1e   : > { %p150_p5 = scmp.eq.s32.totalorder %s149_s29, 0  ;;  %s4429_s0 = sand.u32 1, %s4265_s23  }
  0x1f   : > { %s3720_s17 = smul.u32 3072, %s4273_s25  ;;  %s5321_s4 = sld [smem:[#allocation24_spill]] }
  0x20   : > { %s4433_s18 = scalar_select %p150_p5, %s4265_s23, %s152_s28  }
  0x21   : > { %s3719_s19 = smul.u32 192, %s4429_s0  ;;  %p4441_p6 = pnand %p3757_p4, %p161_p3 }
  0x22   : > { %5320 = sst [smem:[#allocation21_spill]] %s4433_s18  ;;  %s5323_s28 = sand.u32 1, %s4277_s26  }
  0x23   : > { %s5322_s27 = scalar_select %p4441_p6, 1, 0 }
  0x24   : > { %s532_s29 = scalar_lea.vmem [#allocation5], %s3719_s19  ;;  %s4449_s18 = scalar_lea.sflag [#allocation6], %s5323_s28 }
  0x25   : > { %s4439_s15 = scalar_lea.hbm %s5321_s4, %s3720_s17  ;;  %s539_s30 = sshll.u32 %s532_s29, 4  ;;  %s4445_s30 = int_to_ptr.vmem [resolvable:$true] %s539_s30 }
  0x26   : > { %s4041_s23 = scalar_lea.hbm %s4439_s15, 3072  ;;  %p4455_p8 = pneg %p4441_p6 }
  0x27   : > { %p4042_p7 = scmp.ne.s32.totalorder %s4439_s15, %s4041_s23  ;;  %s4046_s19 = scalar_lea.hbm %s5321_s4, 6144 }
  0x28   : > { %s5324_s16 = scalar_select %p4455_p8, 1, 0 }
  0x29   : > { %p4044_p9 = pnand %p4455_p8, %p4042_p7  ;;  %p4047_p11 = scmp.lt.u32.totalorder %s4439_s15, %s5321_s4 }
  0x2a   : > { %p4048_p12 = scmp.lt.u32.totalorder %s4046_s19, %s4041_s23  ;;  %p4050_p0 = scmp.lt.u32.totalorder %s4041_s23, %s4439_s15 }
  0x2b   : > { %p4045_p10 = pneg %p4044_p9 }
  0x2c   : > { %p4049_p13 = por %p4048_p12, %p4047_p11 }
  0x2e   : > { %p4051_p1 = por %p4050_p0, %p4049_p13 }
  0x30   : > { %p4052_p2 = pnand %p4051_p1, %p4045_p10 }
  0x32   : > { %4055 = shalt.err (!%p4052_p2)
}
  0x33   : > { %s4056_s28 = scalar_lea.vmem %s4445_s30, 3072  ;;  %s4279_s17 = smov [#allocation5]  }
  0x34   : > { %p4057_p3 = scmp.ne.s32.totalorder %s4445_s30, %s4056_s28  ;;  %s4061_s20 = sshll.u32 %s4279_s17, 4  ;;  %s4062_s20 = int_to_ptr.vmem [resolvable:$false] %s4061_s20 }
  0x35   : > { %s4063_s14 = scalar_lea.vmem %s4062_s20, 6144  ;;  %p4064_p7 = scmp.lt.s32.totalorder %s4445_s30, %s4062_s20 }
  0x36   : > { %p4059_p4 = pnand %p4057_p3, %p4455_p8  ;;  %p4065_p9 = scmp.lt.s32.totalorder %s4063_s14, %s4056_s28 }
  0x38   : > { %p4060_p5 = pneg %p4059_p4  ;;  %p4066_p11 = por %p4065_p9, %p4064_p7 }
  0x3a   : > { %p4067_p12 = pnand %p4066_p11, %p4060_p5 }
  0x3c   : > { %4070 = shalt.err (!%p4067_p12)
}
  0x3d   : > { %s4280_s23 = smov 192   ;;  %s4281_s19 = smov 12  }
  0x3e   : > { %3746 = dma.hbm_to_vmem [thread:$0]  (!%p4441_p6), %s4439_s15, 3072, %s4445_s30, %s4449_s18, %s4280_s23, %s4280_s23, %s4281_s19  }
  0x3f   : > { %s3347_s29 = sshll.u32 %s4429_s0, 8  ;;  %s3487_s17 = sshll.u32 %s4273_s25, 12 }
  0x40   : > { %s5325_s10 = sld [smem:[#allocation29_spill]]  ;;  %s599_s4 = scalar_lea.vmem [#allocation8], %s3347_s29 }
  0x41   : > { %s606_s1 = sshll.u32 %s599_s4, 4  ;;  %s5326_s13 = sand.u32 1, %s4277_s26   ;;  %s4490_s1 = int_to_ptr.vmem [resolvable:$true] %s606_s1 }
  0x42   : > { %s4494_s11 = scalar_lea.sflag [#allocation9], %s5326_s13 }
  0x46   : > { %s4486_s14 = scalar_lea.hbm %s5325_s10, %s3487_s17  ;;  %s4076_s19 = scalar_lea.hbm %s5325_s10, 8192 }
  0x47   : > { %s4071_s15 = scalar_lea.hbm %s4486_s14, 4096  ;;  %p4077_p1 = scmp.lt.u32.totalorder %s4486_s14, %s5325_s10 }
  0x48   : > { %p4072_p10 = scmp.ne.s32.totalorder %s4486_s14, %s4071_s15  ;;  %p4078_p2 = scmp.lt.u32.totalorder %s4076_s19, %s4071_s15 }
  0x49   : > { %p4080_p4 = scmp.lt.u32.totalorder %s4071_s15, %s4486_s14 }
  0x4a   : > { %p4074_p13 = pnand %p4072_p10, %p4455_p8  ;;  %p4079_p3 = por %p4078_p2, %p4077_p1 }
  0x4c   : > { %p4075_p0 = pneg %p4074_p13  ;;  %p4081_p5 = por %p4080_p4, %p4079_p3 }
  0x4e   : > { %p4082_p7 = pnand %p4081_p5, %p4075_p0 }
  0x50   : > { %4085 = shalt.err (!%p4082_p7)
}
  0x51   : > { %s4086_s4 = scalar_lea.vmem %s4490_s1, 4096  ;;  %s4282_s13 = smov [#allocation8]  }
  0x52   : > { %p4087_p9 = scmp.ne.s32.totalorder %s4490_s1, %s4086_s4  ;;  %s4091_s30 = sshll.u32 %s4282_s13, 4  ;;  %s4092_s30 = int_to_ptr.vmem [resolvable:$false] %s4091_s30 }
  0x53   : > { %s4093_s23 = scalar_lea.vmem %s4092_s30, 8192  ;;  %p4094_p10 = scmp.lt.s32.totalorder %s4490_s1, %s4092_s30 }
  0x54   : > { %p4089_p11 = pnand %p4087_p9, %p4455_p8  ;;  %p4095_p13 = scmp.lt.s32.totalorder %s4093_s23, %s4086_s4 }
  0x56   : > { %p4090_p12 = pneg %p4089_p11  ;;  %p4096_p1 = por %p4095_p13, %p4094_p10 }
  0x58   : > { %p4097_p2 = pnand %p4096_p1, %p4090_p12 }
  0x5a   : > { %4100 = shalt.err (!%p4097_p2)
}
  0x5b   : > { %s4283_s15 = smov 256   ;;  %s4284_s19 = smov 16  }
  0x5c   : > { %3752 = dma.hbm_to_vmem [thread:$0]  (!%p4441_p6), %s4486_s14, 4096, %s4490_s1, %s4494_s11, %s4283_s15, %s4283_s15, %s4284_s19  }
  0x5d   : > { %s5327_s12 = sld [smem:[#allocation31_spill]]  ;;  %s627_s13 = scalar_lea.vmem [#allocation10], %s3347_s29 }
  0x5e   : > { %s634_s30 = sshll.u32 %s627_s13, 4  ;;  %s4530_s23 = sadd.s32 4294967295, %s4277_s26   ;;  %s4527_s30 = int_to_ptr.vmem [resolvable:$true] %s634_s30 }
  0x5f   : > { %p165_p0 = scmp.ne.s32.totalorder %s4261_s22, %s4257_s21  ;;  %p5292_p3 = scmp.eq.s32.totalorder %s4530_s23, 0 }
  0x60   : > { %p3340_p4 = scmp.ge.s32.totalorder %s4277_s26, 1  ;;  %p478_p5 = scmp.lt.s32.totalorder %s4277_s26, 3 }
  0x61   : > { %p4539_p7 = por %p5292_p3, %p165_p0  ;;  %s4285_s29 = smov [#allocation2]  }
  0x62   : > { %p4543_p9 = pnand %p3340_p4, %p478_p5  ;;  %s493_s14 = sshll.u32 %s4285_s29, 4  ;;  %s4547_s14 = int_to_ptr.vmem [resolvable:$true] %s493_s14 }
  0x63   : > { %s4523_s4 = scalar_lea.hbm %s5327_s12, %s3487_s17  ;;  %s3344_s21 = sshll.u32 %s4429_s0, 6 }
  0x64   : > { %s5328_s1 = scalar_select %p4539_p7, 1, 0 }
  0x65   : > { %s5329_s17 = scalar_select %p4543_p9, 1, 0 }
  0x66   : > { %p3739_p11 = pneg %p4543_p9  ;;  %s3486_s15 = sshll.u32 %s4273_s25, 10 }
  0x67   : > { %s5331_s6 = sld [smem:[#allocation26_spill]]  ;;  %s560_s10 = scalar_lea.vmem [#allocation7], %s3344_s21 }
  0x68   : > { %p4555_p12 = pnand %p3739_p11, %p5292_p3  ;;  %s567_s26 = sshll.u32 %s560_s10, 4  ;;  %s4564_s26 = int_to_ptr.vmem [resolvable:$true] %s567_s26 }
  0x69   : > { %s5332_s9 = sld [smem:[#allocation22_spill]] }
  0x6a   : > { %p4103_p13 = pneg %p4555_p12 }
  0x6d   : > { %s4562_s13 = scalar_lea.hbm %s5331_s6, %s3486_s15 }
  0x6f   : > { %s4101_s0 = scalar_lea.hbm %s5332_s9, 256 }
  0x70   : > { %p4102_p10 = scmp.ne.s32.totalorder %s5332_s9, %s4101_s0  ;;  %p4108_p0 = scmp.lt.u32.totalorder %s4101_s0, %s5332_s9 }
  0x72   : > { %p4104_p1 = pnand %p4103_p13, %p4102_p10 }
  0x74   : > { %p4105_p2 = pneg %p4104_p1 }
  0x76   : > { %p4110_p4 = pnand %p4108_p0, %p4105_p2 }
  0x78   : > { %4113 = shalt.err (!%p4110_p4)
}
  0x79   : > { %s4114_s10 = scalar_lea.vmem %s4547_s14, 256  ;;  %p4122_p7 = scmp.lt.s32.totalorder %s4547_s14, %s4547_s14 }
  0x7a   : > { %p4115_p5 = scmp.ne.s32.totalorder %s4547_s14, %s4114_s10  ;;  %p4123_p9 = scmp.lt.s32.totalorder %s4114_s10, %s4114_s10 }
  0x7c   : > { %p4117_p11 = pnand %p4115_p5, %p4103_p13  ;;  %p4124_p6 = por %p4123_p9, %p4122_p7 }
  0x7e   : > { %p4118_p3 = pneg %p4117_p11 }
  0x80   : > { %p4125_p8 = pnand %p4124_p6, %p4118_p3 }
  0x82   : > { %4128 = shalt.err (!%p4125_p8)
}
  0x83   : > { %s4286_s5 = smov 128   ;;  %s4287_s8 = smov 8  }
  0x84   : > { %3742 = dma.hbm_to_vmem [thread:$0]  (!%p4555_p12), %s5332_s9, 256, %s4547_s14, [#allocation3], %s4286_s5, %s4286_s5, %s4287_s8  }
  0x85   : > { %s4129_s15 = scalar_lea.hbm %s4562_s13, 1024  ;;  %p5333_p13 = scmp.ne.s32.totalorder %s5324_s16, 0 }
  0x86   : > { %p4130_p10 = scmp.ne.s32.totalorder %s4562_s13, %s4129_s15  ;;  %s4134_s28 = scalar_lea.hbm %s5331_s6, 2048 }
  0x87   : > { %p4135_p8 = scmp.lt.u32.totalorder %s4562_s13, %s5331_s6  ;;  %p4136_p3 = scmp.lt.u32.totalorder %s4134_s28, %s4129_s15 }
  0x88   : > { %p4132_p7 = pnand %p4130_p10, %p5333_p13  ;;  %p4138_p1 = scmp.lt.u32.totalorder %s4129_s15, %s4562_s13 }
  0x89   : > { %p4137_p9 = por %p4136_p3, %p4135_p8 }
  0x8a   : > { %p4133_p6 = pneg %p4132_p7 }
  0x8b   : > { %p4139_p2 = por %p4138_p1, %p4137_p9 }
  0x8d   : > { %p4140_p0 = pnand %p4139_p2, %p4133_p6 }
  0x8f   : > { %4143 = shalt.err (!%p4140_p0)
}
  0x90   : > { %s4144_s14 = scalar_lea.vmem %s4564_s26, 1024  ;;  %s4288_s19 = smov [#allocation7]  }
  0x91   : > { %p4145_p12 = scmp.ne.s32.totalorder %s4564_s26, %s4144_s14  ;;  %s4149_s5 = sshll.u32 %s4288_s19, 4  ;;  %s4150_s5 = int_to_ptr.vmem [resolvable:$false] %s4149_s5 }
  0x92   : > { %s4151_s8 = scalar_lea.vmem %s4150_s5, 2048  ;;  %p4152_p11 = scmp.lt.s32.totalorder %s4564_s26, %s4150_s5 }
  0x93   : > { %p4147_p4 = pnand %p4145_p12, %p5333_p13  ;;  %p4153_p10 = scmp.lt.s32.totalorder %s4151_s8, %s4144_s14 }
  0x95   : > { %p4148_p5 = pneg %p4147_p4  ;;  %p4154_p7 = por %p4153_p10, %p4152_p11 }
  0x97   : > { %p4155_p8 = pnand %p4154_p7, %p4148_p5 }
  0x99   : > { %4158 = shalt.err (!%p4155_p8)
}
  0x9a   : > { %s4289_s25 = smov 64   ;;  %s4290_s21 = smov 4  }
  0x9b   : > { %p5334_p6 = scmp.ne.s32.totalorder %s5322_s27, 0  ;;  %s4159_s15 = scalar_lea.hbm %s4523_s4, 4096 }
  0x9c   : > { %p4160_p3 = scmp.ne.s32.totalorder %s4523_s4, %s4159_s15  ;;  %s4164_s28 = scalar_lea.hbm %s5327_s12, 8192 }
  0x9d   : > { %3749 = dma.hbm_to_vmem [thread:$0]  (!%p5334_p6), %s4562_s13, 1024, %s4564_s26, %s4449_s18, %s4289_s25, %s4289_s25, %s4290_s21  }
  0x9e   : > { %p4162_p9 = pnand %p4160_p3, %p5333_p13  ;;  %p4165_p2 = scmp.lt.u32.totalorder %s4523_s4, %s5327_s12 }
  0x9f   : > { %p4166_p0 = scmp.lt.u32.totalorder %s4164_s28, %s4159_s15  ;;  %p4168_p4 = scmp.lt.u32.totalorder %s4159_s15, %s4523_s4 }
  0xa0   : > { %p4163_p1 = pneg %p4162_p9 }
  0xa1   : > { %p4167_p12 = por %p4166_p0, %p4165_p2 }
  0xa3   : > { %p4169_p5 = por %p4168_p4, %p4167_p12 }
  0xa5   : > { %p4170_p11 = pnand %p4169_p5, %p4163_p1 }
  0xa7   : > { %4173 = shalt.err (!%p4170_p11)
}
  0xa8   : > { %s4174_s26 = scalar_lea.vmem %s4527_s30, 4096  ;;  %s4291_s18 = smov [#allocation10]  }
  0xa9   : > { %p4175_p10 = scmp.ne.s32.totalorder %s4527_s30, %s4174_s26  ;;  %s4179_s13 = sshll.u32 %s4291_s18, 4  ;;  %s4180_s13 = int_to_ptr.vmem [resolvable:$false] %s4179_s13 }
  0xaa   : > { %s4181_s14 = scalar_lea.vmem %s4180_s13, 8192  ;;  %p4182_p3 = scmp.lt.s32.totalorder %s4527_s30, %s4180_s13 }
  0xab   : > { %p4177_p7 = pnand %p4175_p10, %p5333_p13  ;;  %p4183_p9 = scmp.lt.s32.totalorder %s4181_s14, %s4174_s26 }
  0xad   : > { %p4178_p8 = pneg %p4177_p7  ;;  %p4184_p2 = por %p4183_p9, %p4182_p3 }
  0xaf   : > { %p4185_p0 = pnand %p4184_p2, %p4178_p8 }
  0xb1   : > { %4188 = shalt.err (!%p4185_p0)
}
  0xb2   : > { %3755 = dma.hbm_to_vmem [thread:$0]  (!%p5334_p6), %s4523_s4, 4096, %s4527_s30, %s4494_s11, %s4289_s25, %s4289_s25, %s4290_s21  }
  0xb3   : > { %p5335_p13 = scmp.ne.s32.totalorder %s5329_s17, 0 }
  0xb4   : > { %p5336_p1 = scmp.eq.s32.totalorder (!%p5335_p13), %s4530_s23, 0 }
  0xb5   : > { %652 = sbr.rel (%p5335_p13) target bundleno = 4632 (0x1218), region = 84 }
  0xbc   : > { %4240 = dma.done.wait (%p5336_p1), [#allocation3], 256   ;;  %p5337_p12 = pmov %p5336_p1 }
  0xbd   : > { %s658_s27 = sand.u32 1, %s4530_s23   ;;  %s660_s16 = sand.u32 1, %s4261_s22  }
  0xbe   : > { %4242 = vsyncadd (%p5337_p12), [#allocation3], 4294967040  ;;  %s3721_s19 = smul.u32 192, %s660_s16  ;;  %s659_s5 = scalar_lea.sflag [#allocation6], %s658_s27 }
  0xbf   : > { %p5338_p4 = scmp.ne.s32.totalorder %s5328_s1, 0 }
  0xc0   : > { %s4645_s8 = scalar_lea.vmem [#allocation5], %s3721_s19 }
  0xc1   : > { %4244 = dma.done.wait (%p5338_p4), %s659_s5, 4096  }
  0xc2   : > { %4246 = vsyncadd (%p5338_p4), %s659_s5, 4294963200  ;;  %s3355_s11 = sshll.u32 %s660_s16, 6  ;;  %s3356_s4 = sshll.u32 %s660_s16, 8 }
  0xc3   : > { %s4651_s30 = scalar_lea.vmem [#allocation7], %s3355_s11  ;;  %s677_s17 = scalar_lea.sflag [#allocation9], %s658_s27 }
  0xc4   : > { %s4653_s25 = scalar_lea.vmem [#allocation8], %s3356_s4 }
  0xc5   : > { %4248 = dma.done.wait (%p5338_p4), %s677_s17, 8192  }
  0xc6   : > { %4250 = vsyncadd (%p5338_p4), %s677_s17, 4294959104  ;;  %p775_p6 = scmp.lt.s32.totalorder %s4269_s24, 1  ;;  %s5339_s16 = sld [smem:[#allocation27_spill]] }
  0xc7   : > { %s5340_s17 = sld [smem:[#allocation28_spill]]  ;;  %s5341_s0 = sld [smem:[#allocation25_spill]] }
  0xc8   : > { %s4661_s21 = scalar_select %p775_p6, %s4269_s24, 1 }
  0xc9   : > { %s5342_s12 = sld [smem:[#allocation30_spill]]  ;;  %s5343_s13 = sld [smem:[#allocation32_spill]] }
  0xca   : > { %s3722_s10 = smul.u32 3, %s4661_s21  ;;  %s3358_s28 = sshll.u32 %s4661_s21, 2 }
  0xcb   : > { %s4699_s27 = scalar_lea.vmem [#allocation10], %s3356_s4  ;;  %p3359_p5 = scmp.ne.s32.totalorder %s4269_s24, 0 }
  0xcc   : > { %s790_s19 = scalar_lea.vmem %s5339_s16, %s4661_s21  ;;  %v807_v0 = vld [vmem:[#allocation2] sm:$0xff] (!%p3359_p5)  ;;  %v808_v2 = vld [vmem:[#allocation2 + $0x8] sm:$0xff] (!%p3359_p5) }
  0xcd   : > { %s793_s15 = scalar_lea.vmem %s5340_s17, %s4661_s21  ;;  %s4687_s9 = scalar_lea.vmem %s5341_s0, %s3722_s10 }
  0xce   : > { %806 = sbr.rel (%p3359_p5) target bundleno = 216 (0xd8), region = 108  ;;  %s5344_s0 = sld [smem:[#allocation23_spill]] (!%p3359_p5) }
  0xcf   : > { %s4693_s22 = scalar_lea.vmem %s5342_s12, %s3358_s28  ;;  %s800_s14 = scalar_lea.vmem %s5343_s13, %s4661_s21 }
  0xd4   : > { %v809_v1 = vld [vmem:[%s5344_s0] sm:$0xff] (!%p3359_p5) }
  0xd5   : > { %v810_v3 = vadd.f32 %v809_v1, %v807_v0  ;;  %v811_v4 = vadd.f32 %v809_v1, %v808_v2 }
  0xd7   : > { %812 = vst [vmem:[#allocation11] sm:$0xff] %v810_v3  ;;  %813 = vst [vmem:[#allocation11 + $0x8] sm:$0xff] %v811_v4 }
  0xd8 PF: > { %v3843_v7 = vld [vmem:[%s4645_s8 + $0x4] ss:$12 sps:$4 sm:$0xff]   ;;  %v3845_v8 = vld [vmem:[%s4645_s8] ss:$12 sps:$4 sm:$0xff]   ;;  %v4292_v9 = vmov 0.0   ;;  %v4293_v35 = vmov 0   ;;  %s5345_s4 = scalar_lea.vmem %s5271_s2, %s4661_s21  ;;  %s5346_s13 = scalar_lea.vmem %s5272_s3, %s4661_s21  ;;  %v892_v58 = vlaneseq }
  0xd9   : > { %3583 = vmatprep.subr.bf16.mxu1 %v4292_v9  ;;  %v3846_v10 = vld [vmem:[%s4645_s8 + $0x8] ss:$12 sps:$4 sm:$0xff]   ;;  %1035 = vmatprep.subr.bf16.mxu0 %v3843_v7  ;;  %v3849_v20 = vld [vmem:[%s4645_s8 + $0x18] ss:$12 sps:$4 sm:$0xff]   ;;  %v3850_v21 = vld [vmem:[%s4645_s8 + $0x20] ss:$12 sps:$4 sm:$0xff]   ;;  %s5347_s29 = scalar_lea.vmem %s5276_s7, %s4661_s21 }
  0xda   : > { %v3847_v11 = vld [vmem:[%s4645_s8 + $0x1c] ss:$12 sps:$4 sm:$0xff]   ;;  %1036 = vmatpush1.bf16.msra.mxu0 %v3845_v8  ;;  %3584 = vmatpush3.bf16.msra.mxu1 %v3846_v10  ;;  %v3851_v22 = vld [vmem:[%s4645_s8 + $0x34] ss:$12 sps:$4 sm:$0xff]   ;;  %v3854_v24 = vld [vmem:[%s4645_s8 + $0x38] ss:$12 sps:$4 sm:$0xff]  }
  0xdb   : > { %1037 = vmatprep.subr.bf16.mxu0 %v3847_v11  ;;  %3585 = vmatprep.subr.bf16.mxu1 %v4292_v9  ;;  %v3853_v23 = vld [vmem:[%s4645_s8 + $0x30] ss:$12 sps:$4 sm:$0xff]   ;;  %v3855_v25 = vld [vmem:[%s4645_s8 + $0x4c] ss:$12 sps:$4 sm:$0xff]   ;;  %v3857_v26 = vld [vmem:[%s4645_s8 + $0x48] ss:$12 sps:$4 sm:$0xff]  }
  0xdc   : > { %v3858_v27 = vld [vmem:[%s4645_s8 + $0x50] ss:$12 sps:$4 sm:$0xff]   ;;  %v3861_v29 = vld [vmem:[%s4645_s8 + $0x60] ss:$12 sps:$4 sm:$0xff]   ;;  %v3862_v30 = vld [vmem:[%s4645_s8 + $0x68] ss:$12 sps:$4 sm:$0xff]   ;;  %1067 = vmatprep.mubr.bf16.mxu0 %v4293_v35 }
  0xdd   : > { %v3859_v28 = vld [vmem:[%s4645_s8 + $0x64] ss:$12 sps:$4 sm:$0xff]   ;;  %v3863_v31 = vld [vmem:[%s4645_s8 + $0x7c] ss:$12 sps:$4 sm:$0xff]   ;;  %v3866_v33 = vld [vmem:[%s4645_s8 + $0x80] ss:$12 sps:$4 sm:$0xff]  }
  0xde   : > { %v814_v5 = vld [vmem:[#allocation11] sm:$0xff]  ;;  %v815_v6 = vld [vmem:[#allocation11 + $0x8] sm:$0xff]  ;;  %1038 = vmatpush1.bf16.msra.mxu0 %v3849_v20  ;;  %3586 = vmatpush3.bf16.msra.mxu1 %v3850_v21  ;;  %vm4294_vm0 = vmmov 0   ;;  %v3869_v36 = vld [vmem:[%s4645_s8 + $0x90] ss:$12 sps:$4 sm:$0xff]   ;;  %v4766_v59 = vshrl.u32 %v892_v58, 7 }
  0xdf   : > { %818 = vadd.xlane.f32.xlu0 %v814_v5  ;;  %3587 = vmatprep.subr.bf16.mxu1 %v4292_v9  ;;  %v3865_v32 = vld [vmem:[%s4645_s8 + $0x78] ss:$12 sps:$4 sm:$0xff]   ;;  %v3867_v34 = vld [vmem:[%s4645_s8 + $0x94] ss:$12 sps:$4 sm:$0xff]   ;;  %v3874_v40 = vld [vmem:[%s4645_s8 + $0xb0] ss:$12 sps:$4 sm:$0xff]  }
  0xe0   : > { %1039 = vmatprep.subr.bf16.mxu0 %v3851_v22  ;;  %3599 = vmatprep.mubr.msk.bf16.mxu1 %vm4294_vm0, %v4292_v9  ;;  %v3870_v37 = vld [vmem:[%s4645_s8 + $0x98] ss:$12 sps:$4 sm:$0xff]   ;;  %v3873_v39 = vld [vmem:[%s4645_s8 + $0xa8] ss:$12 sps:$4 sm:$0xff]   ;;  %v3360_v49 = vld [vmem:[%s5345_s4] ss:$0 sm:$0xff] }
  0xe1   : > { %v3871_v38 = vld [vmem:[%s4645_s8 + $0xac] ss:$12 sps:$4 sm:$0xff]   ;;  %v3361_v53 = vld [vmem:[%s5346_s13] ss:$0 sm:$0xff]  ;;  %v898_v60 = vsub.s32 1, %v4766_v59  ;;  %v894_v62 = vsub.s32 0, %v4766_v59 }
  0xe2   : > { %1040 = vmatpush1.bf16.msra.mxu0 %v3853_v23  ;;  %3588 = vmatpush3.bf16.msra.mxu1 %v3854_v24  ;;  %v890_v61 = vld [vmem:[%s4687_s9] sm:$0x7]  ;;  %v902_v63 = vsub.s32 2, %v4766_v59  ;;  %vm1127_vm1 = vcmask 261120   ;;  %vm1248_vm2 = vcmask 1043456   ;;  %vm1220_vm3 = vcmask 64512  }
  0xe3   : > { %820 = vadd.xlane.f32.xlu0 %v815_v6  ;;  %3589 = vmatprep.subr.bf16.mxu1 %v4292_v9  ;;  %v899_v0 = vrot.slane %v890_v61, %v898_v60  ;;  %v895_v1 = vrot.slane %v890_v61, %v894_v62  ;;  %s4295_s9 = smov 96   ;;  %s4296_s5 = smov 64   ;;  %vm2030_vm4 = vcmask 523264   ;;  %vm2033_vm5 = vcmask 785408  }
  0xe4   : > { %1041 = vmatprep.subr.bf16.mxu0 %v3855_v25  ;;  %v903_v4 = vrot.slane %v890_v61, %v902_v63  ;;  %s4297_s11 = smov 32   ;;  %p3478_p11 = scmp.ge.s32.totalorder %s4269_s24, 1 }
  0xe6   : > { %1042 = vmatpush1.bf16.msra.mxu0 %v3857_v26  ;;  %3590 = vmatpush3.bf16.msra.mxu1 %v3858_v27 }
  0xe7   : > { %3591 = vmatprep.subr.bf16.mxu1 %v4292_v9  ;;  %1043 = vmatprep.subr.bf16.mxu0 %v3859_v28 }
  0xea   : > { %1044 = vmatpush1.bf16.msra.mxu0 %v3861_v29  ;;  %3592 = vmatpush3.bf16.msra.mxu1 %v3862_v30 }
  0xeb   : > { %1045 = vmatprep.subr.bf16.mxu0 %v3863_v31  ;;  %3593 = vmatprep.subr.bf16.mxu1 %v4292_v9 }
  0xee   : > { %1046 = vmatpush1.bf16.msra.mxu0 %v3865_v32  ;;  %3594 = vmatpush3.bf16.msra.mxu1 %v3866_v33 }
  0xef   : > { %1047 = vmatprep.subr.bf16.mxu0 %v3867_v34  ;;  %3595 = vmatprep.subr.bf16.mxu1 %v4292_v9 }
  0xf2   : > { %1048 = vmatpush1.bf16.msra.mxu0 %v3869_v36  ;;  %3596 = vmatpush3.bf16.msra.mxu1 %v3870_v37 }
  0xf3   : > { %1049 = vmatprep.subr.bf16.mxu0 %v3871_v38  ;;  %3597 = vmatprep.subr.bf16.mxu1 %v4292_v9 }
  0xf6   : > { %1050 = vmatpush1.bf16.msra.mxu0 %v3873_v39  ;;  %3598 = vmatpush3.bf16.msra.mxu1 %v3874_v40 }
  0xf7   : > { %3603 = vmatprep.subr.bf16.mxu1 %v4292_v9  ;;  %3627 = vmatprep.subr.bf16.mxu0 %v4292_v9 }
 0x16c   : > { %v819_v12 = vpop.xlane.xlu0 %818 }
 0x16d   : > { %v823_v13 = vmul.f32 0.0078125, %v819_v12 }
 0x16f   : > { %v4711_v14 = vsub.f32 %v814_v5, %v823_v13 }
 0x170   : > { %v821_v15 = vpop.xlane.xlu0 %820 }
 0x171   : > { %v824_v16 = vmul.f32 0.0078125, %v821_v15  ;;  %v827_v17 = vmul.f32 %v4711_v14, %v4711_v14 }
 0x173   : > { %v4715_v18 = vsub.f32 %v815_v6, %v824_v16  ;;  %829 = vadd.xlane.f32.xlu1 %v827_v17 }
 0x175   : > { %v828_v19 = vmul.f32 %v4715_v18, %v4715_v18 }
 0x177   : > { %831 = vadd.xlane.f32.xlu1 %v828_v19 }
 0x200   : > { %v830_v41 = vpop.xlane.xlu1 %829 }
 0x201   : > { %v833_v42 = vmul.f32 0.0078125, %v830_v41 }
 0x203   : > { %v835_v43 = vadd.f32 1e-06, %v833_v42 }
 0x204   : > { %v832_v44 = vpop.xlane.xlu1 %831 }
 0x205   : > { %3963 = vrsqrt.f32 %v835_v43  ;;  %v834_v45 = vmul.f32 0.0078125, %v832_v44 }
 0x207   : > { %v836_v46 = vadd.f32 1e-06, %v834_v45 }
 0x209   : > { %3965 = vrsqrt.f32 %v836_v46 }
 0x20f   : > { %v3964_v47 = vpop.eup %3963 }
 0x210   : > { %v839_v48 = vmul.f32 %v3964_v47, %v4711_v14 }
 0x212   : > { %v847_v52 = vmul.f32 %v3360_v49, %v839_v48 }
 0x213   : > { %v3966_v50 = vpop.eup %3965 }
 0x214   : > { %v840_v51 = vmul.f32 %v3966_v50, %v4715_v18  ;;  %v855_v55 = vadd.f32 %v3361_v53, %v847_v52 }
 0x216   : > { %v848_v54 = vmul.f32 %v3360_v49, %v840_v51 }
 0x218   : > { %v856_v56 = vadd.f32 %v3361_v53, %v848_v54 }
 0x21a   : > { %v857_v57 = vpack.c.bf16 %v856_v56, %v855_v55 }
 0x21c   : > { %1068 = vmatmul.mubr.bf16.vlgmr.msra.gmra.mrb[0].mxu0 %v857_v57  ;;  %3600 = vmatmul.mubr.bf16.vlgmr.msra.gmra.mrb[0].mxu1 %v857_v57 }
 0x21d   : > { %3605 = vmatprep.mubr.msk.bf16.mxu1 %vm4294_vm0, %v4292_v9  ;;  %3629 = vmatprep.mubr.msk.bf16.mxu0 %vm4294_vm0, %v4292_v9 }
 0x2ef   : > { %v1069_v2 = vpop.f32.mrb[0].mxu0  ;;  %v1112_v3 = vpop.f32.mrb[0].mxu1 }
 0x2f0   : > { %v1071_v5 = vpop.f32.mrb[1].mxu0  ;;  %v3601_v6 = vpop.f32.mrb[1].mxu1  ;;  %v1070_v14 = vadd.f32 %v1069_v2, %v895_v1  ;;  %v1113_v22 = vadd.f32 %v1112_v3, %v903_v4 }
 0x2f1   : > { %v1072_v7 = vadd.f32 %v1071_v5, %v899_v0  ;;  %v1073_v8 = vpop.f32.mrb[2].mxu0  ;;  %v1115_v10 = vpop.f32.mrb[2].mxu1 }
 0x2f2   : > { %v4778_v11 = vadd.f32 %v1115_v10, %v903_v4  ;;  %v1075_v12 = vpop.f32.mrb[3].mxu0  ;;  %v3602_v13 = vpop.f32.mrb[3].mxu1  ;;  %v1119_v18 = vmul.f32 0.17677669, %v1070_v14  ;;  %v1074_v21 = vadd.f32 %v1073_v8, %v895_v1  ;;  %v4796_v25 = vpack.c.bf16 %v1113_v22, %v1113_v22 }
 0x2f3   : > { %v4780_v15 = vpack.c.bf16 %v1072_v7, %v1072_v7  ;;  %v1076_v16 = vadd.f32 %v1075_v12, %v899_v0 }
 0x2f4   : > { %v4787_v20 = vpack.c.bf16 %v1119_v18, %v1119_v18  ;;  %v1120_v24 = vmul.f32 0.17677669, %v1074_v21  ;;  %v1250_v27 = vsel %vm1248_vm2, %v4796_v25, 0  ;;  %v4823_v55 = vpack.c.bf16 %v4778_v11, %v4778_v11 }
 0x2f5   : > { %v1132_v17 = vsel %vm1127_vm1, %v4780_v15, 0  ;;  %v4785_v19 = vpack.c.bf16 %v1076_v16, %v1076_v16 }
 0x2f6   : > { %3604 = vmatpush3.bf16.xpose.msra.mxu1 %v1132_v17  ;;  %v4798_v26 = vpack.c.bf16 %v1120_v24, %v1120_v24  ;;  %v1296_v61 = vsel %vm1248_vm2, %v4823_v55, 0 }
 0x2f7   : > { %3609 = vmatprep.subr.bf16.mxu1 %v4292_v9  ;;  %v1178_v23 = vsel %vm1127_vm1, %v4785_v19, 0 }
 0x2fd   : > { %3606 = vmatmul.mubr.msk.bf16.vlgmr.msra.gmra.mrb[4].mxu1 %vm1127_vm1, %v4787_v20 }
 0x2fe   : > { %3610 = vmatpush3.bf16.xpose.msra.mxu1 %v1178_v23  ;;  %3611 = vmatprep.mubr.msk.bf16.mxu1 %vm4294_vm0, %v4292_v9 }
 0x2ff   : > { %3615 = vmatprep.subr.bf16.mxu1 %v4292_v9 }
 0x305   : > { %3612 = vmatmul.mubr.msk.bf16.vlgmr.msra.gmra.mrb[8].mxu1 %vm1127_vm1, %v4798_v26 }
 0x306   : > { %3616 = vmatpush3.bf16.msra.mxu1 %v1250_v27  ;;  %3617 = vmatprep.mubr.msk.bf16.mxu1 %vm4294_vm0, %v4292_v9 }
 0x307   : > { %3621 = vmatprep.subr.bf16.mxu1 %v4292_v9 }
 0x3d0   : > { %v1168_v28 = vpop.f32.mrb[4].mxu1 }
 0x3d1   : > { %v3607_v29 = vpop.f32.mrb[5].mxu1  ;;  %v1221_v30 = vsel %vm1220_vm3, %v1168_v28, -inf }
 0x3d2   : > { %1222 = vmax.xlane.f32.xlu0 %v1221_v30  ;;  %v1171_v31 = vpop.f32.mrb[6].mxu1 }
 0x3d3   : > { %v3608_v32 = vpop.f32.mrb[7].mxu1 }
 0x3d8   : > { %v1214_v33 = vpop.f32.mrb[8].mxu1 }
 0x3d9   : > { %v3613_v34 = vpop.f32.mrb[9].mxu1  ;;  %v1224_v36 = vsel %vm1220_vm3, %v1214_v33, -inf }
 0x3da   : > { %1225 = vmax.xlane.f32.xlu1 %v1224_v36  ;;  %v1217_v37 = vpop.f32.mrb[10].mxu1 }
 0x3db   : > { %v3614_v38 = vpop.f32.mrb[11].mxu1 }
 0x3eb   : > { %1394 = vrot.lane.b32.xlu1 %v4785_v19, %s4295_s9 }
 0x45f   : > { %v1223_v39 = vpop.xlane.xlu0 %1222 }
 0x460   : > { %v1227_v40 = vsub.f32 %v1168_v28, %v1223_v39 }
 0x462   : > { %v1229_v41 = vmul.f32 1.442695, %v1227_v40 }
 0x464   : > { %3967 = vpow2.f32 %v1229_v41 }
 0x467   : > { %v1226_v42 = vpop.xlane.xlu1 %1225 }
 0x468   : > { %v1228_v43 = vsub.f32 %v1214_v33, %v1226_v42 }
 0x46a   : > { %v1231_v44 = vmul.f32 1.442695, %v1228_v43 }
 0x46b   : > { %v1395_v50 = vpop.permute.xlu1 %1394 }
 0x46c   : > { %3969 = vpow2.f32 %v1231_v44  ;;  %v1400_v3 = vsel %vm1127_vm1, %v1395_v50, 0 }
 0x46e   : > { %v3968_v45 = vpop.eup %3967 }
 0x46f   : > { %v1233_v46 = vsel %vm1220_vm3, %v3968_v45, 0.0 }
 0x470   : > { %1234 = vadd.xlane.f32.xlu0 %v1233_v46 }
 0x476   : > { %v3970_v47 = vpop.eup %3969 }
 0x477   : > { %v1236_v48 = vsel %vm1220_vm3, %v3970_v47, 0.0 }
 0x478   : > { %1237 = vadd.xlane.f32.xlu1 %v1236_v48 }
 0x486   : > { %1342 = vrot.lane.b32.xlu0 %v4780_v15, %s4295_s9 }
 0x489   : > { %1339 = vrot.lane.b32.xlu1 %v4787_v20, %s4295_s9 }
 0x48d   : > { %1391 = vrot.lane.b32.xlu1 %v4798_v26, %s4295_s9 }
 0x4fd   : > { %v1235_v49 = vpop.xlane.xlu0 %1234 }
 0x4fe   : > { %3971 = vrcp.f32 %v1235_v49 }
 0x501   : > { %v1343_v51 = vpop.permute.xlu0 %1342 }
 0x502   : > { %v1348_v52 = vsel %vm1127_vm1, %v1343_v51, 0 }
 0x503   : > { %3628 = vmatpush3.bf16.xpose.msra.mxu0 %v1348_v52 }
 0x504   : > { %3639 = vmatprep.subr.bf16.mxu0 %v4292_v9 }
 0x505   : > { %v1238_v53 = vpop.xlane.xlu1 %1237 }
 0x506   : > { %3973 = vrcp.f32 %v1238_v53 }
 0x508   : > { %v3972_v54 = vpop.eup %3971 }
 0x509   : > { %v1241_v56 = vmul.f32 %v3972_v54, %v3968_v45  ;;  %v1340_v57 = vpop.permute.xlu1 %1339 }
 0x50a   : > { %3630 = vmatmul.mubr.msk.bf16.vlgmr.msra.gmra.mrb[4].mxu0 %vm1127_vm1, %v1340_v57 }
 0x50b   : > { %v1243_v58 = vpack.c.bf16 %v1241_v56, %v1241_v56  ;;  %3641 = vmatprep.mubr.msk.bf16.mxu0 %vm4294_vm0, %v4292_v9 }
 0x50d   : > { %3618 = vmatmul.mubr.msk.bf16.vlgmr.msra.gmra.mrb[12].mxu1 %vm1220_vm3, %v1243_v58  ;;  %v1392_v4 = vpop.permute.xlu1 %1391 }
 0x50e   : > { %3622 = vmatpush3.bf16.msra.mxu1 %v1296_v61  ;;  %3623 = vmatprep.mubr.msk.bf16.mxu1 %vm4294_vm0, %v4292_v9 }
 0x50f   : > { %3633 = vmatprep.subr.bf16.mxu1 %v4292_v9 }
 0x510   : > { %v3974_v0 = vpop.eup %3973 }
 0x511   : > { %v1242_v1 = vmul.f32 %v3974_v0, %v3970_v47 }
 0x513   : > { %v1244_v2 = vpack.c.bf16 %v1242_v1, %v1242_v1 }
 0x515   : > { %3624 = vmatmul.mubr.msk.bf16.vlgmr.msra.gmra.mrb[16].mxu1 %vm1220_vm3, %v1244_v2 }
 0x516   : > { %3635 = vmatprep.mubr.msk.bf16.mxu1 %vm4294_vm0, %v4292_v9 }
 0x517   : > { %3634 = vmatpush3.bf16.xpose.msra.mxu1 %v1400_v3 }
 0x518   : > { %3645 = vmatprep.subr.bf16.mxu1 %v4292_v9 }
 0x51e   : > { %3636 = vmatmul.mubr.msk.bf16.vlgmr.msra.gmra.mrb[20].mxu1 %vm1127_vm1, %v1392_v4 }
 0x51f   : > { %3647 = vmatprep.mubr.msk.bf16.mxu1 %vm4294_vm0, %v4292_v9 }
 0x5dd   : > { %v1384_v5 = vpop.f32.mrb[4].mxu0 }
 0x5de   : > { %v3631_v6 = vpop.f32.mrb[5].mxu0  ;;  %v1442_v7 = vsel %vm1220_vm3, %v1384_v5, -inf }
 0x5df   : > { %1443 = vmax.xlane.f32.xlu0 %v1442_v7  ;;  %v1387_v8 = vpop.f32.mrb[6].mxu0 }
 0x5e0   : > { %v4843_v10 = vpop.f32.mrb[12].mxu1  ;;  %v3632_v11 = vpop.f32.mrb[7].mxu0 }
 0x5e1   : > { %v3619_v12 = vpop.f32.mrb[13].mxu1 }
 0x5e2   : > { %v1289_v13 = vpop.f32.mrb[14].mxu1 }
 0x5e3   : > { %v3620_v14 = vpop.f32.mrb[15].mxu1 }
 0x5e8   : > { %v4845_v16 = vpop.f32.mrb[16].mxu1 }
 0x5e9   : > { %v3625_v17 = vpop.f32.mrb[17].mxu1 }
 0x5ea   : > { %v1335_v18 = vpop.f32.mrb[18].mxu1 }
 0x5eb   : > { %v3626_v21 = vpop.f32.mrb[19].mxu1 }
 0x5f1   : > { %v1436_v22 = vpop.f32.mrb[20].mxu1 }
 0x5f2   : > { %v3637_v23 = vpop.f32.mrb[21].mxu1  ;;  %v1445_v24 = vsel %vm1220_vm3, %v1436_v22, -inf }
 0x5f3   : > { %1446 = vmax.xlane.f32.xlu1 %v1445_v24  ;;  %v1439_v27 = vpop.f32.mrb[22].mxu1 }
 0x5f4   : > { %v3638_v28 = vpop.f32.mrb[23].mxu1 }
 0x604   : > { %1516 = vrot.lane.b32.xlu1 %v4823_v55, %s4295_s9 }
 0x608   : > { %1566 = vrot.lane.b32.xlu1 %v4780_v15, %s4296_s5 }
 0x60c   : > { %1616 = vrot.lane.b32.xlu1 %v4785_v19, %s4296_s5 }
 0x610   : > { %1614 = vrot.lane.b32.xlu1 %v4798_v26, %s4296_s5 }
 0x66c   : > { %v1444_v29 = vpop.xlane.xlu0 %1443 }
 0x66d   : > { %v1448_v30 = vsub.f32 %v1384_v5, %v1444_v29 }
 0x66f   : > { %v1450_v31 = vmul.f32 1.442695, %v1448_v30 }
 0x671   : > { %3975 = vpow2.f32 %v1450_v31 }
 0x67b   : > { %v3976_v32 = vpop.eup %3975 }
 0x67c   : > { %v1454_v33 = vsel %vm1220_vm3, %v3976_v32, 0.0 }
 0x67d   : > { %1455 = vadd.xlane.f32.xlu0 %v1454_v33 }
 0x680   : > { %v1447_v34 = vpop.xlane.xlu1 %1446 }
 0x681   : > { %v1449_v36 = vsub.f32 %v1436_v22, %v1447_v34 }
 0x683   : > { %v1452_v37 = vmul.f32 1.442695, %v1449_v36 }
 0x684   : > { %v1517_v38 = vpop.permute.xlu1 %1516 }
 0x685   : > { %3977 = vpow2.f32 %v1452_v37  ;;  %v1522_v39 = vsel %vm1248_vm2, %v1517_v38, 0 }
 0x686   : > { %3646 = vmatpush3.bf16.msra.mxu1 %v1522_v39 }
 0x687   : > { %3657 = vmatprep.subr.bf16.mxu1 %v4292_v9 }
 0x688   : > { %v1567_v48 = vpop.permute.xlu1 %1566 }
 0x689   : > { %v1572_v53 = vsel %vm1127_vm1, %v1567_v48, 0 }
 0x68c   : > { %v1617_v52 = vpop.permute.xlu1 %1616 }
 0x68d   : > { %v1622_v56 = vsel %vm1127_vm1, %v1617_v52, 0 }
 0x68f   : > { %v3978_v40 = vpop.eup %3977 }
 0x690   : > { %v1457_v41 = vsel %vm1220_vm3, %v3978_v40, 0.0  ;;  %v1615_v58 = vpop.permute.xlu1 %1614 }
 0x691   : > { %1458 = vadd.xlane.f32.xlu0 %v1457_v41 }
 0x6a7   : > { %1467 = vrot.lane.b32.xlu0 %v4796_v25, %s4295_s9 }
 0x6ab   : > { %1564 = vrot.lane.b32.xlu0 %v4787_v20, %s4296_s5 }
 0x70a   : > { %v1456_v42 = vpop.xlane.xlu0 %1455 }
 0x70b   : > { %3979 = vrcp.f32 %v1456_v42 }
 0x715   : > { %v3980_v43 = vpop.eup %3979 }
 0x716   : > { %v1462_v45 = vmul.f32 %v3980_v43, %v3976_v32 }
 0x718   : > { %v1464_v49 = vpack.c.bf16 %v1462_v45, %v1462_v45 }
 0x71e   : > { %v1459_v44 = vpop.xlane.xlu0 %1458 }
 0x71f   : > { %3981 = vrcp.f32 %v1459_v44 }
 0x722   : > { %v1468_v46 = vpop.permute.xlu0 %1467 }
 0x723   : > { %v1473_v47 = vsel %vm1248_vm2, %v1468_v46, 0 }
 0x724   : > { %3640 = vmatpush3.bf16.msra.mxu0 %v1473_v47 }
 0x725   : > { %3651 = vmatprep.subr.bf16.mxu0 %v4292_v9 }
 0x726   : > { %v1565_v57 = vpop.permute.xlu0 %1564 }
 0x727   : > { %3642 = vmatmul.mubr.msk.bf16.vlgmr.msra.gmra.mrb[8].mxu0 %vm1220_vm3, %v1464_v49 }
 0x728   : > { %3653 = vmatprep.mubr.msk.bf16.mxu0 %vm4294_vm0, %v4292_v9 }
 0x729   : > { %v3982_v50 = vpop.eup %3981 }
 0x72a   : > { %v1463_v51 = vmul.f32 %v3982_v50, %v3978_v40 }
 0x72c   : > { %v1465_v54 = vpack.c.bf16 %v1463_v51, %v1463_v51 }
 0x72d   : > { %3652 = vmatpush3.bf16.xpose.msra.mxu0 %v1572_v53 }
 0x72e   : > { %3648 = vmatmul.mubr.msk.bf16.vlgmr.msra.gmra.mrb[24].mxu1 %vm1220_vm3, %v1465_v54  ;;  %3663 = vmatprep.subr.bf16.mxu0 %v4292_v9 }
 0x72f   : > { %3658 = vmatpush3.bf16.xpose.msra.mxu1 %v1622_v56  ;;  %3659 = vmatprep.mubr.msk.bf16.mxu1 %vm4294_vm0, %v4292_v9 }
 0x730   : > { %3669 = vmatprep.subr.bf16.mxu1 %v4292_v9 }
 0x734   : > { %3654 = vmatmul.mubr.msk.bf16.vlgmr.msra.gmra.mrb[12].mxu0 %vm1127_vm1, %v1565_v57 }
 0x735   : > { %3665 = vmatprep.mubr.msk.bf16.mxu0 %vm4294_vm0, %v4292_v9 }
 0x736   : > { %3660 = vmatmul.mubr.msk.bf16.vlgmr.msra.gmra.mrb[28].mxu1 %vm1127_vm1, %v1615_v58 }
 0x737   : > { %3671 = vmatprep.mubr.msk.bf16.mxu1 %vm4294_vm0, %v4292_v9 }
 0x7fa   : > { %v4882_v61 = vpop.f32.mrb[8].mxu0 }
 0x7fb   : > { %v3643_v0 = vpop.f32.mrb[9].mxu0 }
 0x7fc   : > { %v1512_v1 = vpop.f32.mrb[10].mxu0 }
 0x7fd   : > { %v3644_v2 = vpop.f32.mrb[11].mxu0 }
 0x801   : > { %v4884_v3 = vpop.f32.mrb[24].mxu1 }
 0x802   : > { %v3828_v4 = vpack.i.bf16 %v4884_v3, %v4882_v61  ;;  %v3649_v5 = vpop.f32.mrb[25].mxu1 }
 0x803   : > { %v1561_v6 = vpop.f32.mrb[26].mxu1 }
 0x804   : > { %v3650_v7 = vpop.f32.mrb[27].mxu1 }
 0x807   : > { %v1608_v8 = vpop.f32.mrb[12].mxu0 }
 0x808   : > { %v3655_v11 = vpop.f32.mrb[13].mxu0  ;;  %v1664_v12 = vsel %vm1220_vm3, %v1608_v8, -inf }
 0x809   : > { %1665 = vmax.xlane.f32.xlu0 %v1664_v12  ;;  %v1611_v13 = vpop.f32.mrb[14].mxu0  ;;  %v1658_v14 = vpop.f32.mrb[28].mxu1 }
 0x80a   : > { %v3656_v17 = vpop.f32.mrb[15].mxu0  ;;  %v3661_v18 = vpop.f32.mrb[29].mxu1  ;;  %v1667_v21 = vsel %vm1220_vm3, %v1658_v14, -inf }
 0x80b   : > { %1668 = vmax.xlane.f32.xlu1 %v1667_v21  ;;  %v1661_v22 = vpop.f32.mrb[30].mxu1 }
 0x80c   : > { %v3662_v23 = vpop.f32.mrb[31].mxu1 }
 0x81c   : > { %1736 = vrot.lane.b32.xlu1 %v4823_v55, %s4296_s5 }
 0x820   : > { %1786 = vrot.lane.b32.xlu1 %v4780_v15, %s4297_s11 }
 0x824   : > { %1836 = vrot.lane.b32.xlu1 %v4785_v19, %s4297_s11 }
 0x828   : > { %1834 = vrot.lane.b32.xlu1 %v4798_v26, %s4297_s11 }
 0x896   : > { %v1666_v24 = vpop.xlane.xlu0 %1665 }
 0x897   : > { %v1670_v27 = vsub.f32 %v1608_v8, %v1666_v24 }
 0x898   : > { %v1669_v28 = vpop.xlane.xlu1 %1668 }
 0x899   : > { %v1672_v29 = vmul.f32 1.442695, %v1670_v27  ;;  %v1671_v30 = vsub.f32 %v1658_v14, %v1669_v28 }
 0x89b   : > { %3983 = vpow2.f32 %v1672_v29  ;;  %v1674_v31 = vmul.f32 1.442695, %v1671_v30 }
 0x89c   : > { %v1737_v32 = vpop.permute.xlu1 %1736 }
 0x89d   : > { %3985 = vpow2.f32 %v1674_v31  ;;  %v1742_v33 = vsel %vm1248_vm2, %v1737_v32, 0 }
 0x89e   : > { %3670 = vmatpush3.bf16.msra.mxu1 %v1742_v33 }
 0x89f   : > { %3681 = vmatprep.subr.bf16.mxu1 %v4292_v9 }
 0x8a0   : > { %v1787_v41 = vpop.permute.xlu1 %1786 }
 0x8a4   : > { %v1837_v46 = vpop.permute.xlu1 %1836 }
 0x8a5   : > { %v3984_v15 = vpop.eup %3983  ;;  %v1842_v48 = vsel %vm1127_vm1, %v1837_v46, 0 }
 0x8a6   : > { %v1676_v19 = vsel %vm1220_vm3, %v3984_v15, 0.0 }
 0x8a7   : > { %v3986_v34 = vpop.eup %3985  ;;  %1677 = vadd.xlane.f32.xlu0 %v1676_v19 }
 0x8a8   : > { %v1679_v26 = vsel %vm1220_vm3, %v3986_v34, 0.0  ;;  %v1835_v50 = vpop.permute.xlu1 %1834 }
 0x8ab   : > { %1680 = vadd.xlane.f32.xlu0 %v1679_v26 }
 0x8c1   : > { %1688 = vrot.lane.b32.xlu0 %v4796_v25, %s4296_s5 }
 0x8c5   : > { %1784 = vrot.lane.b32.xlu0 %v4787_v20, %s4297_s11  ;;  %v1792_v20 = vsel %vm1127_vm1, %v1787_v41, 0  ;;  %v3879_v41 = vld [vmem:[%s4651_s30 + $0x20] sm:$0xff]  }
 0x934   : > { %v1678_v36 = vpop.xlane.xlu0 %1677 }
 0x935   : > { %3987 = vrcp.f32 %v1678_v36 }
 0x938   : > { %v1681_v37 = vpop.xlane.xlu0 %1680 }
 0x939   : > { %3989 = vrcp.f32 %v1681_v37  ;;  %v3875_v37 = vld [vmem:[%s4651_s30] sm:$0xff]  }
 0x93c   : > { %v1689_v38 = vpop.permute.xlu0 %1688 }
 0x93d   : > { %v1694_v39 = vsel %vm1248_vm2, %v1689_v38, 0  ;;  %v3876_v38 = vld [vmem:[%s4651_s30 + $0x8] sm:$0xff]  }
 0x93e   : > { %3664 = vmatpush3.bf16.msra.mxu0 %v1694_v39  ;;  %v3877_v39 = vld [vmem:[%s4651_s30 + $0x10] sm:$0xff]  }
 0x93f   : > { %v3988_v40 = vpop.eup %3987  ;;  %3675 = vmatprep.subr.bf16.mxu0 %v4292_v9 }
 0x940   : > { %v1684_v42 = vmul.f32 %v3988_v40, %v3984_v15  ;;  %v1785_v49 = vpop.permute.xlu0 %1784  ;;  %v3878_v40 = vld [vmem:[%s4651_s30 + $0x18] sm:$0xff]  }
 0x942   : > { %v1686_v43 = vpack.c.bf16 %v1684_v42, %v1684_v42  ;;  %v3880_v42 = vld [vmem:[%s4651_s30 + $0x28] sm:$0xff]  }
 0x943   : > { %v3990_v44 = vpop.eup %3989 }
 0x944   : > { %v1685_v45 = vmul.f32 %v3990_v44, %v3986_v34  ;;  %3666 = vmatmul.mubr.msk.bf16.vlgmr.msra.gmra.mrb[16].mxu0 %vm1220_vm3, %v1686_v43  ;;  %v3881_v43 = vld [vmem:[%s4651_s30 + $0x30] sm:$0xff]   ;;  %v3882_v44 = vld [vmem:[%s4651_s30 + $0x38] sm:$0xff]  }
 0x945   : > { %3677 = vmatprep.mubr.msk.bf16.mxu0 %vm4294_vm0, %v4292_v9 }
 0x946   : > { %v1687_v47 = vpack.c.bf16 %v1685_v45, %v1685_v45 }
 0x947   : > { %3676 = vmatpush3.bf16.xpose.msra.mxu0 %v1792_v20 }
 0x948   : > { %3672 = vmatmul.mubr.msk.bf16.vlgmr.msra.gmra.mrb[32].mxu1 %vm1220_vm3, %v1687_v47  ;;  %3687 = vmatprep.subr.bf16.mxu0 %v4292_v9 }
 0x949   : > { %3682 = vmatpush3.bf16.xpose.msra.mxu1 %v1842_v48  ;;  %3683 = vmatprep.mubr.msk.bf16.mxu1 %vm4294_vm0, %v4292_v9 }
 0x94a   : > { %3693 = vmatprep.subr.bf16.mxu1 %v4292_v9 }
 0x94e   : > { %3678 = vmatmul.mubr.msk.bf16.vlgmr.msra.gmra.mrb[20].mxu0 %vm1127_vm1, %v1785_v49 }
 0x94f   : > { %3689 = vmatprep.mubr.msk.bf16.mxu0 %vm4294_vm0, %v4292_v9 }
 0x950   : > { %3684 = vmatmul.mubr.msk.bf16.vlgmr.msra.gmra.mrb[36].mxu1 %vm1127_vm1, %v1835_v50 }
 0x951   : > { %3695 = vmatprep.mubr.msk.bf16.mxu1 %vm4294_vm0, %v4292_v9 }
 0xa17   : > { %v1730_v51 = vpop.f32.mrb[16].mxu0 }
 0xa18   : > { %v3667_v52 = vpop.f32.mrb[17].mxu0 }
 0xa19   : > { %v1733_v53 = vpop.f32.mrb[18].mxu0 }
 0xa1a   : > { %v3668_v54 = vpop.f32.mrb[19].mxu0 }
 0xa1b   : > { %v1778_v56 = vpop.f32.mrb[32].mxu1 }
 0xa1c   : > { %v3833_v57 = vpack.i.bf16 %v1778_v56, %v1730_v51  ;;  %v3673_v58 = vpop.f32.mrb[33].mxu1 }
 0xa1d   : > { %v1781_v0 = vpop.f32.mrb[34].mxu1 }
 0xa1e   : > { %v3674_v1 = vpop.f32.mrb[35].mxu1 }
 0xa21   : > { %v1828_v2 = vpop.f32.mrb[20].mxu0 }
 0xa22   : > { %v3679_v5 = vpop.f32.mrb[21].mxu0  ;;  %v1884_v6 = vsel %vm1220_vm3, %v1828_v2, -inf }
 0xa23   : > { %1885 = vmax.xlane.f32.xlu0 %v1884_v6  ;;  %v1831_v7 = vpop.f32.mrb[22].mxu0  ;;  %v1878_v8 = vpop.f32.mrb[36].mxu1 }
 0xa24   : > { %v3680_v11 = vpop.f32.mrb[23].mxu0  ;;  %v3685_v12 = vpop.f32.mrb[37].mxu1  ;;  %v1887_v13 = vsel %vm1220_vm3, %v1878_v8, -inf }
 0xa25   : > { %1888 = vmax.xlane.f32.xlu1 %v1887_v13  ;;  %v1881_v14 = vpop.f32.mrb[38].mxu1 }
 0xa26   : > { %v3686_v17 = vpop.f32.mrb[39].mxu1 }
 0xa36   : > { %1956 = vrot.lane.b32.xlu1 %v4823_v55, %s4297_s11 }
 0xa3a   : > { %3829 = vrot.lane.b32.xlu1 %v3828_v4, %s4297_s11 }
 0xa3e   : > { %3834 = vrot.lane.b32.xlu1 %v3833_v57, %s4296_s5 }
 0xab0   : > { %v1886_v18 = vpop.xlane.xlu0 %1885 }
 0xab1   : > { %v1890_v21 = vsub.f32 %v1828_v2, %v1886_v18 }
 0xab2   : > { %v1889_v22 = vpop.xlane.xlu1 %1888 }
 0xab3   : > { %v1892_v23 = vmul.f32 1.442695, %v1890_v21  ;;  %v1891_v24 = vsub.f32 %v1878_v8, %v1889_v22  ;;  %v4035_v21 = vld [vmem:[#allocation11] sm:$0xff] }
 0xab5   : > { %3991 = vpow2.f32 %v1892_v23  ;;  %v1894_v27 = vmul.f32 1.442695, %v1891_v24 }
 0xab6   : > { %v1957_v28 = vpop.permute.xlu1 %1956 }
 0xab7   : > { %3993 = vpow2.f32 %v1894_v27  ;;  %v1962_v29 = vsel %vm1248_vm2, %v1957_v28, 0  ;;  %v3883_v28 = vld [vmem:[%s4653_s25] ss:$16 sps:$4 sm:$0xff]  }
 0xab8   : > { %3694 = vmatpush3.bf16.msra.mxu1 %v1962_v29  ;;  %v3885_v29 = vld [vmem:[%s4653_s25 + $0x4] ss:$16 sps:$4 sm:$0xff]  }
 0xab9   : > { %2406 = vmatprep.subr.bf16.mxu1 %v3885_v29  ;;  %v3933_v29 = vld [vmem:[%s4699_s27] sm:$0xff]  }
 0xaba   : > { %v3830_v53 = vpop.permute.xlu1 %3829 }
 0xabb   : > { %v3832_v56 = vunpack.i.h.bf16 %v3830_v53  ;;  %v3831_v57 = vunpack.i.l.bf16 %v3830_v53  ;;  %v3924_v53 = vld [vmem:[%s4653_s25 + $0xcc] ss:$16 sps:$4 sm:$0xff]  }
 0xabd   : > { %v2029_v1 = vsel %vm1127_vm1, %v4845_v16, %v3832_v56  ;;  %v2028_v2 = vsel %vm1127_vm1, %v4843_v10, %v3831_v57  ;;  %v3402_v16 = vld [vmem:[%s5347_s29] ss:$0 sm:$0xff]  ;;  %v3922_v56 = vld [vmem:[%s4653_s25 + $0xc8] ss:$16 sps:$4 sm:$0xff]   ;;  %v3927_v57 = vld [vmem:[%s4653_s25 + $0xe4] ss:$16 sps:$4 sm:$0xff]  }
 0xabe   : > { %v3835_v54 = vpop.permute.xlu1 %3834 }
 0xabf   : > { %v3992_v55 = vpop.eup %3991  ;;  %v3837_v58 = vunpack.i.h.bf16 %v3835_v54 }
 0xac0   : > { %v1896_v30 = vsel %vm1220_vm3, %v3992_v55, 0.0 }
 0xac1   : > { %v3994_v31 = vpop.eup %3993  ;;  %1897 = vadd.xlane.f32.xlu0 %v1896_v30  ;;  %v2032_v8 = vsel %vm2030_vm4, %v2029_v1, %v3837_v58  ;;  %v3888_v30 = vld [vmem:[%s4653_s25 + $0xc] ss:$16 sps:$4 sm:$0xff]  }
 0xac2   : > { %v1899_v61 = vsel %vm1220_vm3, %v3994_v31, 0.0  ;;  %v3930_v58 = vld [vmem:[%s4653_s25 + $0xec] ss:$16 sps:$4 sm:$0xff]  }
 0xac5   : > { %1900 = vadd.xlane.f32.xlu0 %v1899_v61  ;;  %v3894_v61 = vld [vmem:[%s4653_s25 + $0x2c] ss:$16 sps:$4 sm:$0xff]  }
 0xadb   : > { %1908 = vrot.lane.b32.xlu0 %v4796_v25, %s4297_s11 }
 0xb4e   : > { %v1898_v3 = vpop.xlane.xlu0 %1897 }
 0xb4f   : > { %3995 = vrcp.f32 %v1898_v3  ;;  %v3889_v3 = vld [vmem:[%s4653_s25 + $0x20] ss:$16 sps:$4 sm:$0xff]  }
 0xb52   : > { %v1901_v4 = vpop.xlane.xlu0 %1900 }
 0xb53   : > { %3997 = vrcp.f32 %v1901_v4  ;;  %v3892_v4 = vld [vmem:[%s4653_s25 + $0x28] ss:$16 sps:$4 sm:$0xff]  }
 0xb56   : > { %v1909_v32 = vpop.permute.xlu0 %1908 }
 0xb57   : > { %v1914_v33 = vsel %vm1248_vm2, %v1909_v32, 0 }
 0xb58   : > { %3688 = vmatpush3.bf16.msra.mxu0 %v1914_v33 }
 0xb59   : > { %v3996_v15 = vpop.eup %3995  ;;  %3699 = vmatprep.subr.bf16.mxu0 %v4292_v9 }
 0xb5a   : > { %v1904_v19 = vmul.f32 %v3996_v15, %v3992_v55  ;;  %v3886_v55 = vld [vmem:[%s4653_s25 + $0x8] ss:$16 sps:$4 sm:$0xff]  }
 0xb5c   : > { %v1906_v34 = vpack.c.bf16 %v1904_v19, %v1904_v19 }
 0xb5d   : > { %v3998_v26 = vpop.eup %3997 }
 0xb5e   : > { %v1905_v36 = vmul.f32 %v3998_v26, %v3994_v31  ;;  %3690 = vmatmul.mubr.msk.bf16.vlgmr.msra.gmra.mrb[24].mxu0 %vm1220_vm3, %v1906_v34  ;;  %v3891_v31 = vld [vmem:[%s4653_s25 + $0x24] ss:$16 sps:$4 sm:$0xff]  }
 0xb5f   : > { %3715 = vmatprep.mubr.msk.bf16.mxu0 %vm4294_vm0, %v4292_v9  ;;  %3700 = vmatpush3.bf16.msra.mxu0 %v3875_v37  ;;  %v3897_v37 = vld [vmem:[%s4653_s25 + $0x44] ss:$16 sps:$4 sm:$0xff]  }
 0xb60   : > { %v1907_v25 = vpack.c.bf16 %v1905_v36, %v1905_v36  ;;  %3701 = vmatprep.subr.bf16.mxu0 %v4292_v9 }
 0xb62   : > { %3696 = vmatmul.mubr.msk.bf16.vlgmr.msra.gmra.mrb[40].mxu1 %vm1220_vm3, %v1907_v25 }
 0xb63   : > { %2438 = vmatprep.mubr.bf16.mxu1 %v4293_v35  ;;  %3702 = vmatpush3.bf16.msra.mxu0 %v3876_v38  ;;  %v3900_v38 = vld [vmem:[%s4653_s25 + $0x4c] ss:$16 sps:$4 sm:$0xff]  }
 0xb64   : > { %3703 = vmatprep.subr.bf16.mxu0 %v4292_v9  ;;  %2407 = vmatpush1.bf16.msra.mxu1 %v3883_v28  ;;  %v3932_v28 = vld [vmem:[%s4699_s27 + $0xc0] sm:$0xff]  }
 0xb65   : > { %2408 = vmatprep.subr.bf16.mxu1 %v3891_v31  ;;  %v3936_v31 = vld [vmem:[%s4699_s27 + $0xc8] sm:$0xff]  }
 0xb67   : > { %3704 = vmatpush3.bf16.msra.mxu0 %v3877_v39  ;;  %v3895_v39 = vld [vmem:[%s4653_s25 + $0x40] ss:$16 sps:$4 sm:$0xff]  }
 0xb68   : > { %3705 = vmatprep.subr.bf16.mxu0 %v4292_v9  ;;  %2409 = vmatpush1.bf16.msra.mxu1 %v3889_v3  ;;  %v3938_v3 = vld [vmem:[%s4699_s27 + $0x88] sm:$0xff]  }
 0xb69   : > { %2410 = vmatprep.subr.bf16.mxu1 %v3897_v37  ;;  %v3948_v37 = vld [vmem:[%s4699_s27 + $0xe0] sm:$0xff]  }
 0xb6b   : > { %3706 = vmatpush3.bf16.msra.mxu0 %v3878_v40  ;;  %v3898_v40 = vld [vmem:[%s4653_s25 + $0x48] ss:$16 sps:$4 sm:$0xff]  }
 0xb6c   : > { %3707 = vmatprep.subr.bf16.mxu0 %v4292_v9  ;;  %2411 = vmatpush1.bf16.msra.mxu1 %v3895_v39  ;;  %v3950_v39 = vld [vmem:[%s4699_s27 + $0xa0] sm:$0xff]  }
 0xb6f   : > { %3708 = vmatpush3.bf16.msra.mxu0 %v3879_v41  ;;  %v3903_v41 = vld [vmem:[%s4653_s25 + $0x64] ss:$16 sps:$4 sm:$0xff]  }
 0xb70   : > { %3709 = vmatprep.subr.bf16.mxu0 %v4292_v9  ;;  %2412 = vmatprep.subr.bf16.mxu1 %v3903_v41  ;;  %v3952_v41 = vld [vmem:[%s4699_s27 + $0xe8] sm:$0xff]  }
 0xb73   : > { %3710 = vmatpush3.bf16.msra.mxu0 %v3880_v42  ;;  %v3906_v42 = vld [vmem:[%s4653_s25 + $0x6c] ss:$16 sps:$4 sm:$0xff]  }
 0xb74   : > { %3711 = vmatprep.subr.bf16.mxu0 %v4292_v9 }
 0xb77   : > { %3712 = vmatpush3.bf16.msra.mxu0 %v3881_v43  ;;  %v3901_v43 = vld [vmem:[%s4653_s25 + $0x60] ss:$16 sps:$4 sm:$0xff]  }
 0xb78   : > { %3713 = vmatprep.subr.bf16.mxu0 %v4292_v9  ;;  %v3836_v9 = vunpack.i.l.bf16 %v3835_v54  ;;  %2413 = vmatpush1.bf16.msra.mxu1 %v3901_v43  ;;  %v3919_v54 = vld [vmem:[%s4653_s25 + $0xc0] ss:$16 sps:$4 sm:$0xff]   ;;  %v3954_v43 = vld [vmem:[%s4699_s27 + $0xa8] sm:$0xff]  }
 0xb7a   : > { %v2031_v7 = vsel %vm2030_vm4, %v2028_v2, %v3836_v9  ;;  %v3925_v9 = vld [vmem:[%s4653_s25 + $0xe0] ss:$16 sps:$4 sm:$0xff]  }
 0xb7b   : > { %3714 = vmatpush3.bf16.msra.mxu0 %v3882_v44  ;;  %v3904_v44 = vld [vmem:[%s4653_s25 + $0x68] ss:$16 sps:$4 sm:$0xff]  }
 0xb7c   : > { %2449 = vmatprep.subr.bf16.mxu0 %v3888_v30  ;;  %v3935_v30 = vld [vmem:[%s4699_s27 + $0x48] sm:$0xff]  }
 0xc31   : > { %v1950_v45 = vpop.f32.mrb[24].mxu0 }
 0xc32   : > { %v3691_v46 = vpop.f32.mrb[25].mxu0 }
 0xc33   : > { %v1953_v20 = vpop.f32.mrb[26].mxu0  ;;  %v3912_v46 = vld [vmem:[%s4653_s25 + $0x8c] ss:$16 sps:$4 sm:$0xff]  }
 0xc34   : > { %v3692_v47 = vpop.f32.mrb[27].mxu0  ;;  %v3907_v20 = vld [vmem:[%s4653_s25 + $0x80] ss:$16 sps:$4 sm:$0xff]  }
 0xc35   : > { %v1998_v48 = vpop.f32.mrb[40].mxu1  ;;  %v3910_v47 = vld [vmem:[%s4653_s25 + $0x88] ss:$16 sps:$4 sm:$0xff]  }
 0xc36   : > { %v3838_v49 = vpack.i.bf16 %v1998_v48, %v1950_v45  ;;  %v3697_v50 = vpop.f32.mrb[41].mxu1  ;;  %v3909_v45 = vld [vmem:[%s4653_s25 + $0x84] ss:$16 sps:$4 sm:$0xff]  }
 0xc37   : > { %v2001_v51 = vpop.f32.mrb[42].mxu1  ;;  %2414 = vmatprep.subr.bf16.mxu1 %v3909_v45  ;;  %v3915_v48 = vld [vmem:[%s4653_s25 + $0xa4] ss:$16 sps:$4 sm:$0xff]   ;;  %v3913_v50 = vld [vmem:[%s4653_s25 + $0xa0] ss:$16 sps:$4 sm:$0xff]  }
 0xc38   : > { %3839 = vrot.lane.b32.xlu0 %v3838_v49, %s4295_s9  ;;  %v3698_v52 = vpop.f32.mrb[43].mxu1  ;;  %2415 = vmatpush1.bf16.msra.mxu1 %v3907_v20  ;;  %v3918_v49 = vld [vmem:[%s4653_s25 + $0xac] ss:$16 sps:$4 sm:$0xff]   ;;  %v3916_v51 = vld [vmem:[%s4653_s25 + $0xa8] ss:$16 sps:$4 sm:$0xff]   ;;  %v3956_v45 = vld [vmem:[%s4699_s27 + $0xf0] sm:$0xff]  }
 0xc39   : > { %2416 = vmatprep.subr.bf16.mxu1 %v3915_v48  ;;  %v3921_v52 = vld [vmem:[%s4653_s25 + $0xc4] ss:$16 sps:$4 sm:$0xff]   ;;  %v3960_v48 = vld [vmem:[%s4699_s27 + $0xf8] sm:$0xff]  }
 0xc3a   : > { %v3958_v20 = vld [vmem:[%s4699_s27 + $0xb0] sm:$0xff]  }
 0xc3c   : > { %2417 = vmatpush1.bf16.msra.mxu1 %v3913_v50  ;;  %v3962_v50 = vld [vmem:[%s4699_s27 + $0xb8] sm:$0xff]  }
 0xc3d   : > { %2418 = vmatprep.subr.bf16.mxu1 %v3921_v52  ;;  %v2240_v52 = vsub.s32 3, %v4766_v59 }
 0xc40   : > { %2419 = vmatpush1.bf16.msra.mxu1 %v3919_v54 }
 0xc41   : > { %2420 = vmatprep.subr.bf16.mxu1 %v3927_v57 }
 0xc44   : > { %2421 = vmatpush1.bf16.msra.mxu1 %v3925_v9 }
 0xcaa   : > { %v3840_v0 = vpop.permute.xlu0 %3839 }
 0xcab   : > { %v3842_v5 = vunpack.i.h.bf16 %v3840_v0  ;;  %v3841_v6 = vunpack.i.l.bf16 %v3840_v0  ;;  %v3928_v0 = vld [vmem:[%s4653_s25 + $0xe8] ss:$16 sps:$4 sm:$0xff]  }
 0xcad   : > { %v2035_v11 = vsel %vm2033_vm5, %v2032_v8, %v3842_v5  ;;  %v2034_v12 = vsel %vm2033_vm5, %v2031_v7, %v3841_v6 }
 0xcae   : > { %v2036_v13 = vpack.c.bf16 %v2035_v11, %v2034_v12 }
 0xcb0   : > { %3716 = vmatmul.mubr.bf16.vlgmr.msra.gmra.mrb[28].mxu0 %v2036_v13  ;;  %v3411_v13 = vld [vmem:[%s790_s19] ss:$0 sm:$0xff] }
 0xcb1   : > { %2481 = vmatprep.mubr.bf16.mxu0 %v4293_v35  ;;  %v4036_v35 = vld [vmem:[#allocation11 + $0x8] sm:$0xff]  ;;  %2450 = vmatpush1.bf16.msra.mxu0 %v3886_v55  ;;  %v3934_v55 = vld [vmem:[%s4699_s27 + $0x80] sm:$0xff]  }
 0xcb2   : > { %2451 = vmatprep.subr.bf16.mxu0 %v3894_v61  ;;  %v3937_v61 = vld [vmem:[%s4699_s27 + $0x8] sm:$0xff]  }
 0xcb5   : > { %2452 = vmatpush1.bf16.msra.mxu0 %v3892_v4  ;;  %v3939_v4 = vld [vmem:[%s4699_s27 + $0x50] sm:$0xff]  }
 0xcb6   : > { %2453 = vmatprep.subr.bf16.mxu0 %v3900_v38  ;;  %v3949_v38 = vld [vmem:[%s4699_s27 + $0x20] sm:$0xff]  }
 0xcb9   : > { %2454 = vmatpush1.bf16.msra.mxu0 %v3898_v40  ;;  %v3951_v40 = vld [vmem:[%s4699_s27 + $0x68] sm:$0xff]  }
 0xcba   : > { %2455 = vmatprep.subr.bf16.mxu0 %v3906_v42  ;;  %v3953_v42 = vld [vmem:[%s4699_s27 + $0x28] sm:$0xff]  }
 0xcbd   : > { %2456 = vmatpush1.bf16.msra.mxu0 %v3904_v44  ;;  %v3955_v44 = vld [vmem:[%s4699_s27 + $0x70] sm:$0xff]  }
 0xcbe   : > { %2457 = vmatprep.subr.bf16.mxu0 %v3912_v46  ;;  %v3957_v46 = vld [vmem:[%s4699_s27 + $0x30] sm:$0xff]  }
 0xcc1   : > { %2458 = vmatpush1.bf16.msra.mxu0 %v3910_v47  ;;  %v3959_v47 = vld [vmem:[%s4699_s27 + $0x78] sm:$0xff]  }
 0xcc2   : > { %2459 = vmatprep.subr.bf16.mxu0 %v3918_v49  ;;  %v3961_v49 = vld [vmem:[%s4699_s27 + $0x38] sm:$0xff]  }
 0xcc5   : > { %2460 = vmatpush1.bf16.msra.mxu0 %v3916_v51  ;;  %v2224_v51 = vld [vmem:[%s4693_s22] sm:$0xf] }
 0xcc6   : > { %2461 = vmatprep.subr.bf16.mxu0 %v3924_v53  ;;  %v2229_v53 = vrot.slane %v2224_v51, %v894_v62  ;;  %v2237_v54 = vrot.slane %v2224_v51, %v902_v63  ;;  %v2241_v57 = vrot.slane %v2224_v51, %v2240_v52 }
 0xcc9   : > { %2462 = vmatpush1.bf16.msra.mxu0 %v3922_v56  ;;  %v2233_v56 = vrot.slane %v2224_v51, %v898_v60 }
 0xcca   : > { %2463 = vmatprep.subr.bf16.mxu0 %v3930_v58 }
 0xccd   : > { %2464 = vmatpush1.bf16.msra.mxu0 %v3928_v0 }
 0xcce   : > { %3561 = vmatprep.subr.bf16.mxu0 %v3932_v28 }
 0xd83   : > { %v2142_v10 = vpop.f32.mrb[28].mxu0 }
 0xd84   : > { %v2143_v14 = vadd.f32 %v3402_v16, %v2142_v10  ;;  %v3717_v17 = vpop.f32.mrb[29].mxu0 }
 0xd85   : > { %v2145_v18 = vpop.f32.mrb[30].mxu0  ;;  %v3412_v17 = vld [vmem:[%s793_s15] ss:$0 sm:$0xff] }
 0xd86   : > { %v4971_v22 = vadd.f32 %v4035_v21, %v2143_v14  ;;  %v2146_v23 = vadd.f32 %v3402_v16, %v2145_v18  ;;  %v3718_v24 = vpop.f32.mrb[31].mxu0 }
 0xd88   : > { %v4973_v27 = vadd.f32 %v4036_v35, %v2146_v23  ;;  %2153 = vadd.xlane.f32.xlu1 %v4971_v22  ;;  %v3931_v35 = vld [vmem:[%s4699_s27 + $0x40] sm:$0xff]  }
 0xd89   : > { %3539 = vmatprep.subr.bf16.mxu1 %v3931_v35 }
 0xd8a   : > { %2155 = vadd.xlane.f32.xlu0 %v4973_v27 }
 0xe15   : > { %v2154_v32 = vpop.xlane.xlu1 %2153 }
 0xe16   : > { %v2157_v33 = vmul.f32 0.0078125, %v2154_v32  ;;  %v3940_v32 = vld [vmem:[%s4699_s27 + $0xd0] sm:$0xff]  }
 0xe17   : > { %v2156_v15 = vpop.xlane.xlu0 %2155 }
 0xe18   : > { %v4986_v19 = vsub.f32 %v4971_v22, %v2157_v33  ;;  %v2158_v34 = vmul.f32 0.0078125, %v2156_v15  ;;  %v3941_v33 = vld [vmem:[%s4699_s27 + $0x10] sm:$0xff]  }
 0xe19   : > { %v3942_v15 = vld [vmem:[%s4699_s27 + $0x90] sm:$0xff]  }
 0xe1a   : > { %v4989_v26 = vsub.f32 %v4973_v27, %v2158_v34  ;;  %v2161_v36 = vmul.f32 %v4986_v19, %v4986_v19  ;;  %v3944_v34 = vld [vmem:[%s4699_s27 + $0xd8] sm:$0xff]  }
 0xe1c   : > { %2163 = vadd.xlane.f32.xlu0 %v2161_v36  ;;  %v2162_v25 = vmul.f32 %v4989_v26, %v4989_v26  ;;  %v3946_v36 = vld [vmem:[%s4699_s27 + $0x98] sm:$0xff]  }
 0xe20   : > { %2165 = vadd.xlane.f32.xlu0 %v2162_v25  ;;  %v3947_v25 = vld [vmem:[%s4699_s27 + $0x60] sm:$0xff]  }
 0xea9   : > { %v2164_v1 = vpop.xlane.xlu0 %2163 }
 0xeaa   : > { %v2167_v2 = vmul.f32 0.0078125, %v2164_v1 }
 0xeac   : > { %v2169_v5 = vadd.f32 1e-06, %v2167_v2 }
 0xead   : > { %v2166_v6 = vpop.xlane.xlu0 %2165 }
 0xeae   : > { %3999 = vrsqrt.f32 %v2169_v5  ;;  %v2168_v7 = vmul.f32 0.0078125, %v2166_v6 }
 0xeb0   : > { %v2170_v8 = vadd.f32 1e-06, %v2168_v7 }
 0xeb2   : > { %4001 = vrsqrt.f32 %v2170_v8 }
 0xeb8   : > { %v4000_v11 = vpop.eup %3999 }
 0xeb9   : > { %v2173_v12 = vmul.f32 %v4000_v11, %v4986_v19  ;;  %v3943_v19 = vld [vmem:[%s4699_s27 + $0x58] sm:$0xff]  }
 0xebb   : > { %v2181_v14 = vmul.f32 %v3411_v13, %v2173_v12 }
 0xebc   : > { %v4002_v16 = vpop.eup %4001 }
 0xebd   : > { %v2174_v10 = vmul.f32 %v4002_v16, %v4989_v26  ;;  %v2189_v21 = vadd.f32 %v3412_v17, %v2181_v14  ;;  %v3945_v26 = vld [vmem:[%s4699_s27 + $0x18] sm:$0xff]  }
 0xebf   : > { %v2182_v18 = vmul.f32 %v3411_v13, %v2174_v10 }
 0xec1   : > { %v2190_v23 = vadd.f32 %v3412_v17, %v2182_v18 }
 0xec3   : > { %v2191_v24 = vpack.c.bf16 %v2190_v23, %v2189_v21 }
 0xec5   : > { %2439 = vmatmul.mubr.bf16.vlgmr.msra.gmra.mrb[44].mxu1 %v2191_v24  ;;  %2482 = vmatmul.mubr.bf16.vlgmr.msra.gmra.mrb[32].mxu0 %v2191_v24 }
 0xec6   : > { %3540 = vmatpush3.bf16.msra.mxu1 %v3933_v29  ;;  %3562 = vmatpush3.bf16.msra.mxu0 %v3934_v55 }
 0xec7   : > { %3541 = vmatprep.subr.bf16.mxu1 %v3935_v30  ;;  %3563 = vmatprep.subr.bf16.mxu0 %v3936_v31 }
 0xeca   : > { %3542 = vmatpush3.bf16.msra.mxu1 %v3937_v61  ;;  %3564 = vmatpush3.bf16.msra.mxu0 %v3938_v3 }
 0xecb   : > { %3543 = vmatprep.subr.bf16.mxu1 %v3939_v4  ;;  %3565 = vmatprep.subr.bf16.mxu0 %v3940_v32 }
 0xece   : > { %3544 = vmatpush3.bf16.msra.mxu1 %v3941_v33  ;;  %3566 = vmatpush3.bf16.msra.mxu0 %v3942_v15 }
 0xecf   : > { %3545 = vmatprep.subr.bf16.mxu1 %v3943_v19  ;;  %3567 = vmatprep.subr.bf16.mxu0 %v3944_v34 }
 0xed2   : > { %3546 = vmatpush3.bf16.msra.mxu1 %v3945_v26  ;;  %3568 = vmatpush3.bf16.msra.mxu0 %v3946_v36 }
 0xed3   : > { %3547 = vmatprep.subr.bf16.mxu1 %v3947_v25  ;;  %3569 = vmatprep.subr.bf16.mxu0 %v3948_v37 }
 0xed6   : > { %3548 = vmatpush3.bf16.msra.mxu1 %v3949_v38  ;;  %3570 = vmatpush3.bf16.msra.mxu0 %v3950_v39 }
 0xed7   : > { %3549 = vmatprep.subr.bf16.mxu1 %v3951_v40  ;;  %3571 = vmatprep.subr.bf16.mxu0 %v3952_v41 }
 0xeda   : > { %3550 = vmatpush3.bf16.msra.mxu1 %v3953_v42  ;;  %3572 = vmatpush3.bf16.msra.mxu0 %v3954_v43 }
 0xedb   : > { %3551 = vmatprep.subr.bf16.mxu1 %v3955_v44  ;;  %3573 = vmatprep.subr.bf16.mxu0 %v3956_v45 }
 0xede   : > { %3552 = vmatpush3.bf16.msra.mxu1 %v3957_v46  ;;  %3574 = vmatpush3.bf16.msra.mxu0 %v3958_v20 }
 0xedf   : > { %3553 = vmatprep.subr.bf16.mxu1 %v3959_v47  ;;  %3575 = vmatprep.subr.bf16.mxu0 %v3960_v48 }
 0xee2   : > { %3554 = vmatpush3.bf16.msra.mxu1 %v3961_v49  ;;  %3576 = vmatpush3.bf16.msra.mxu0 %v3962_v50 }
 0xf98   : > { %v2440_v58 = vpop.f32.mrb[44].mxu1  ;;  %v2483_v9 = vpop.f32.mrb[32].mxu0 }
 0xf99   : > { %v2441_v0 = vadd.f32 %v2440_v58, %v2229_v53  ;;  %v2484_v1 = vadd.f32 %v2483_v9, %v2237_v54  ;;  %v2442_v2 = vpop.f32.mrb[45].mxu1  ;;  %v2485_v5 = vpop.f32.mrb[33].mxu0 }
 0xf9a   : > { %v5071_v6 = vadd.f32 %v2442_v2, %v2233_v56  ;;  %v5073_v7 = vadd.f32 %v2485_v5, %v2241_v57  ;;  %v2444_v8 = vpop.f32.mrb[46].mxu1  ;;  %v2487_v11 = vpop.f32.mrb[34].mxu0 }
 0xf9b   : > { %v5075_v62 = vmul.f32 0.70710677, %v2441_v0  ;;  %v5077_v12 = vmul.f32 0.70710677, %v2484_v1  ;;  %v2446_v10 = vpop.f32.mrb[47].mxu1  ;;  %v2489_v21 = vpop.f32.mrb[35].mxu0  ;;  %v5089_v29 = vadd.f32 %v2444_v8, %v2229_v53  ;;  %v5094_v31 = vadd.f32 %v2487_v11, %v2237_v54 }
 0xf9c   : > { %v5080_v59 = vmul.f32 0.70710677, %v5071_v6  ;;  %v5086_v16 = vmul.f32 0.70710677, %v5073_v7  ;;  %v5096_v3 = vadd.f32 %v2446_v10, %v2233_v56  ;;  %v5106_v37 = vadd.f32 %v2489_v21, %v2241_v57 }
 0xf9d   : > { %v2524_v60 = vand.u32 2147483647, %v5075_v62  ;;  %v2526_v63 = vand.u32 2147483647, %v5077_v12  ;;  %v5092_v30 = vmul.f32 0.70710677, %v5089_v29 }
 0xf9e   : > { %v2525_v13 = vand.u32 2147483647, %v5080_v59  ;;  %v2527_v35 = vand.u32 2147483647, %v5086_v16  ;;  %v5100_v33 = vmul.f32 0.70710677, %v5094_v31 }
 0xf9f   : > { %v2532_v14 = vmul.f32 0.3275911, %v2524_v60  ;;  %v2534_v17 = vmul.f32 0.3275911, %v2526_v63  ;;  %v2528_v4 = vand.u32 2147483647, %v5092_v30 }
 0xfa0   : > { %v2533_v18 = vmul.f32 0.3275911, %v2525_v13  ;;  %v2535_v55 = vmul.f32 0.3275911, %v2527_v35  ;;  %v2636_v32 = vsub.f32 0.0, %v2524_v60  ;;  %v2638_v15 = vsub.f32 0.0, %v2526_v63 }
 0xfa1   : > { %v2540_v23 = vadd.f32 1.0, %v2532_v14  ;;  %v2542_v24 = vadd.f32 1.0, %v2534_v17  ;;  %v2536_v19 = vmul.f32 0.3275911, %v2528_v4  ;;  %v2637_v34 = vsub.f32 0.0, %v2525_v13 }
 0xfa2   : > { %v2541_v28 = vadd.f32 1.0, %v2533_v18  ;;  %v2543_v61 = vadd.f32 1.0, %v2535_v55  ;;  %v2530_v26 = vand.u32 2147483647, %v5100_v33  ;;  %v5104_v36 = vmul.f32 0.70710677, %v5096_v3 }
 0xfa3   : > { %4003 = vrcp.f32 %v2540_v23  ;;  %v2544_v25 = vadd.f32 1.0, %v2536_v19  ;;  %v2644_v38 = vmul.f32 %v2636_v32, %v2524_v60  ;;  %v2646_v42 = vmul.f32 %v2638_v15, %v2526_v63 }
 0xfa4   : > { %4005 = vrcp.f32 %v2542_v24  ;;  %v2538_v39 = vmul.f32 0.3275911, %v2530_v26  ;;  %v5109_v40 = vand.u32 2147483647, %v5104_v36  ;;  %v2639_v43 = vsub.f32 0.0, %v2527_v35 }
 0xfa5   : > { %4007 = vrcp.f32 %v2541_v28  ;;  %v2645_v46 = vmul.f32 %v2637_v34, %v2525_v13  ;;  %v5117_v48 = vmul.f32 0.5, %v2441_v0  ;;  %v5119_v49 = vmul.f32 0.5, %v2484_v1 }
 0xfa6   : > { %4009 = vrcp.f32 %v2543_v61  ;;  %v2546_v20 = vadd.f32 1.0, %v2538_v39  ;;  %v2537_v47 = vmul.f32 0.3275911, %v5109_v40  ;;  %v5123_v51 = vmul.f32 0.70710677, %v5106_v37 }
 0xfa7   : > { %4011 = vrcp.f32 %v2544_v25  ;;  %v2652_v53 = vmul.f32 1.442695, %v2644_v38  ;;  %v2656_v58 = vmul.f32 1.442695, %v2646_v42  ;;  %v2647_v9 = vmul.f32 %v2639_v43, %v2527_v35 }
 0xfa8   : > { %4013 = vrcp.f32 %v2546_v20  ;;  %v2545_v54 = vadd.f32 1.0, %v2537_v47  ;;  %v5128_v2 = vand.u32 2147483647, %v5123_v51  ;;  %v2654_v5 = vmul.f32 1.442695, %v2645_v46 }
 0xfa9   : > { %v2640_v8 = vsub.f32 0.0, %v2528_v4  ;;  %v2642_v63 = vsub.f32 0.0, %v2530_v26  ;;  %v2658_v21 = vmul.f32 1.442695, %v2647_v9  ;;  %vm2508_vm6 = vcmp.ge.f32.partialorder %v5075_v62, 0.0 }
 0xfaa   : > { %4015 = vrcp.f32 %v2545_v54  ;;  %v2539_v13 = vmul.f32 0.3275911, %v5128_v2  ;;  %v2641_v42 = vsub.f32 0.0, %v5109_v40  ;;  %vm2510_vm7 = vcmp.ge.f32.partialorder %v5077_v12, 0.0 }
 0xfab   : > { %4017 = vpow2.f32 %v2652_v53  ;;  %v2648_v32 = vmul.f32 %v2640_v8, %v2528_v4  ;;  %v2650_v15 = vmul.f32 %v2642_v63, %v2530_v26  ;;  %v2643_v8 = vsub.f32 0.0, %v5128_v2 }
 0xfac   : > { %4019 = vpow2.f32 %v2656_v58  ;;  %v2547_v23 = vadd.f32 1.0, %v2539_v13  ;;  %vm2509_vm8 = vcmp.ge.f32.partialorder %v5080_v59, 0.0  ;;  %vm2512_vm9 = vcmp.ge.f32.partialorder %v5092_v30, 0.0 }
 0xfad   : > { %v5111_v41 = vpop.eup %4003  ;;  %4021 = vpow2.f32 %v2654_v5  ;;  %v2660_v47 = vmul.f32 1.442695, %v2648_v32  ;;  %v2649_v5 = vmul.f32 %v2641_v42, %v5109_v40  ;;  %vm2514_vm10 = vcmp.ge.f32.partialorder %v5100_v33, 0.0 }
 0xfae   : > { %v5113_v44 = vpop.eup %4005  ;;  %v2564_v45 = vmul.f32 1.0614054, %v5111_v41  ;;  %4023 = vrcp.f32 %v2547_v23  ;;  %vm2511_vm11 = vcmp.ge.f32.partialorder %v5086_v16, 0.0  ;;  %vm2513_vm12 = vcmp.ge.f32.partialorder %v5104_v36, 0.0 }
 0xfaf   : > { %v2566_v50 = vmul.f32 1.0614054, %v5113_v44  ;;  %v5125_v56 = vpop.eup %4007  ;;  %4025 = vpow2.f32 %v2658_v21  ;;  %vm2515_vm13 = vcmp.ge.f32.partialorder %v5123_v51, 0.0  ;;  %v2495_v51 = vmul.f32 0.5, %v5073_v7 }
 0xfb0   : > { %v2572_v52 = vadd.f32 -1.4531521, %v2564_v45  ;;  %v2565_v1 = vmul.f32 1.0614054, %v5125_v56  ;;  %v5132_v11 = vpop.eup %4009  ;;  %4027 = vpow2.f32 %v2660_v47 }
 0xfb1   : > { %v2574_v57 = vadd.f32 -1.4531521, %v2566_v50  ;;  %v2567_v17 = vmul.f32 1.0614054, %v5132_v11  ;;  %v5139_v55 = vpop.eup %4011 }
 0xfb2   : > { %v2580_v0 = vmul.f32 %v5111_v41, %v2572_v52  ;;  %v2573_v14 = vadd.f32 -1.4531521, %v2565_v1  ;;  %v2568_v38 = vmul.f32 1.0614054, %v5139_v55  ;;  %v5146_v43 = vpop.eup %4013  ;;  %v2664_v52 = vmul.f32 1.442695, %v2650_v15 }
 0xfb3   : > { %v2582_v60 = vmul.f32 %v5113_v44, %v2574_v57  ;;  %v2575_v28 = vadd.f32 -1.4531521, %v2567_v17  ;;  %v2570_v50 = vmul.f32 1.0614054, %v5146_v43 }
 0xfb4   : > { %v2588_v10 = vadd.f32 1.4214138, %v2580_v0  ;;  %v2581_v35 = vmul.f32 %v5125_v56, %v2573_v14  ;;  %v2576_v46 = vadd.f32 -1.4531521, %v2568_v38  ;;  %v5154_v9 = vpop.eup %4015  ;;  %4029 = vpow2.f32 %v2664_v52 }
 0xfb5   : > { %v2590_v18 = vadd.f32 1.4214138, %v2582_v60  ;;  %v2583_v25 = vmul.f32 %v5132_v11, %v2575_v28  ;;  %v2578_v1 = vadd.f32 -1.4531521, %v2570_v50  ;;  %v4018_v60 = vpop.eup %4017  ;;  %v2569_v21 = vmul.f32 1.0614054, %v5154_v9 }
 0xfb6   : > { %v2596_v24 = vmul.f32 %v5111_v41, %v2588_v10  ;;  %v2589_v34 = vadd.f32 1.4214138, %v2581_v35  ;;  %v2584_v58 = vmul.f32 %v5139_v55, %v2576_v46  ;;  %v4020_v17 = vpop.eup %4019  ;;  %v2662_v38 = vmul.f32 1.442695, %v2649_v5 }
 0xfb7   : > { %v2598_v61 = vmul.f32 %v5113_v44, %v2590_v18  ;;  %v2591_v26 = vadd.f32 1.4214138, %v2583_v25  ;;  %v2586_v18 = vmul.f32 %v5146_v43, %v2578_v1  ;;  %v4022_v23 = vpop.eup %4021 }
 0xfb8   : > { %v2604_v19 = vadd.f32 -0.28449672, %v2596_v24  ;;  %v2597_v4 = vmul.f32 %v5125_v56, %v2589_v34  ;;  %v2592_v14 = vadd.f32 1.4214138, %v2584_v58  ;;  %v5166_v28 = vpop.eup %4023  ;;  %4031 = vpow2.f32 %v2662_v38 }
 0xfb9   : > { %v2606_v39 = vadd.f32 -0.28449672, %v2598_v61  ;;  %v2599_v57 = vmul.f32 %v5132_v11, %v2591_v26  ;;  %v4298_v61 = vmov -1.0   ;;  %v2594_v15 = vadd.f32 1.4214138, %v2586_v18 }
 0xfba   : > { %v2612_v45 = vmul.f32 %v5111_v41, %v2604_v19  ;;  %v2605_v54 = vadd.f32 -0.28449672, %v2597_v4  ;;  %v2516_v32 = vsel %vm2508_vm6, 1.0, %v4298_v61  ;;  %v2577_v19 = vadd.f32 -1.4531521, %v2569_v21 }
 0xfbb   : > { %v2614_v20 = vmul.f32 %v5113_v44, %v2606_v39  ;;  %v2607_v10 = vadd.f32 -0.28449672, %v2599_v57  ;;  %v4026_v39 = vpop.eup %4025  ;;  %v2518_v42 = vsel %vm2510_vm7, 1.0, %v4298_v61  ;;  %v2571_v62 = vmul.f32 1.0614054, %v5166_v28 }
 0xfbc   : > { %v2620_v53 = vadd.f32 0.2548296, %v2612_v45  ;;  %v2613_v13 = vmul.f32 %v5125_v56, %v2605_v54  ;;  %v2602_v45 = vmul.f32 %v5146_v43, %v2594_v15  ;;  %v2585_v4 = vmul.f32 %v5154_v9, %v2577_v19 }
 0xfbd   : > { %v2622_v0 = vadd.f32 0.2548296, %v2614_v20  ;;  %v2615_v35 = vmul.f32 %v5132_v11, %v2607_v10  ;;  %v2517_v59 = vsel %vm2509_vm8, 1.0, %v4298_v61  ;;  %v2520_v21 = vsel %vm2512_vm9, 1.0, %v4298_v61 }
 0xfbe   : > { %v2628_v63 = vmul.f32 %v5111_v41, %v2620_v53  ;;  %v2621_v24 = vadd.f32 0.2548296, %v2613_v13  ;;  %v2600_v41 = vmul.f32 %v5139_v55, %v2592_v14  ;;  %v2610_v50 = vadd.f32 -0.28449672, %v2602_v45 }
 0xfbf   : > { %v2630_v40 = vmul.f32 %v5113_v44, %v2622_v0  ;;  %v2651_v44 = vmul.f32 %v2643_v8, %v5128_v2  ;;  %v2623_v20 = vadd.f32 0.2548296, %v2615_v35  ;;  %v2593_v52 = vadd.f32 1.4214138, %v2585_v4  ;;  %v4028_v8 = vpop.eup %4027 }
 0xfc0   : > { %v2668_v34 = vmul.f32 %v4018_v60, %v2628_v63  ;;  %v2608_v25 = vadd.f32 -0.28449672, %v2600_v41  ;;  %v2629_v46 = vmul.f32 %v5125_v56, %v2621_v24  ;;  %v2579_v2 = vadd.f32 -1.4531521, %v2571_v62  ;;  %v4030_v18 = vpop.eup %4029 }
 0xfc1   : > { %v2670_v26 = vmul.f32 %v4020_v17, %v2630_v40  ;;  %v2666_v12 = vmul.f32 1.442695, %v2651_v44  ;;  %v2618_v57 = vmul.f32 %v5146_v43, %v2610_v50  ;;  %v2601_v58 = vmul.f32 %v5154_v9, %v2593_v52 }
 0xfc2   : > { %v2616_v47 = vmul.f32 %v5139_v55, %v2608_v25  ;;  %v2676_v53 = vsub.f32 1.0, %v2668_v34  ;;  %v2587_v0 = vmul.f32 %v5166_v28, %v2579_v2  ;;  %v2669_v56 = vmul.f32 %v4022_v23, %v2629_v46  ;;  %v4032_v45 = vpop.eup %4031 }
 0xfc3   : > { %v2678_v1 = vsub.f32 1.0, %v2670_v26  ;;  %v2631_v60 = vmul.f32 %v5132_v11, %v2623_v20  ;;  %v2626_v63 = vadd.f32 0.2548296, %v2618_v57  ;;  %v2609_v13 = vadd.f32 -0.28449672, %v2601_v58 }
 0xfc4   : > { %v2624_v54 = vadd.f32 0.2548296, %v2616_v47  ;;  %v2595_v10 = vadd.f32 1.4214138, %v2587_v0  ;;  %v2684_v14 = vmul.f32 %v2676_v53, %v2516_v32  ;;  %4033 = vpow2.f32 %v2666_v12 }
 0xfc5   : > { %v2634_v23 = vmul.f32 %v5146_v43, %v2626_v63  ;;  %v2617_v30 = vmul.f32 %v5154_v9, %v2609_v13  ;;  %v2686_v40 = vmul.f32 %v2678_v1, %v2518_v42  ;;  %v2677_v24 = vsub.f32 1.0, %v2669_v56 }
 0xfc6   : > { %v2632_v5 = vmul.f32 %v5139_v55, %v2624_v54  ;;  %v2603_v55 = vmul.f32 %v5166_v28, %v2595_v10  ;;  %v2671_v35 = vmul.f32 %v4026_v39, %v2631_v60  ;;  %v2692_v19 = vadd.f32 1.0, %v2684_v14 }
 0xfc7   : > { %v2674_v41 = vmul.f32 %v4030_v18, %v2634_v23  ;;  %v2625_v32 = vadd.f32 0.2548296, %v2617_v30  ;;  %v2496_v34 = vmul.f32 0.5, %v5089_v29  ;;  %v2522_v43 = vsel %vm2514_vm10, 1.0, %v4298_v61 }
 0xfc8   : > { %v2672_v17 = vmul.f32 %v4028_v8, %v2632_v5  ;;  %v2611_v15 = vadd.f32 -0.28449672, %v2603_v55  ;;  %v2694_v4 = vadd.f32 1.0, %v2686_v40  ;;  %v2685_v33 = vmul.f32 %v2677_v24, %v2517_v59 }
 0xfc9   : > { %v2682_v38 = vsub.f32 1.0, %v2674_v41  ;;  %v2633_v44 = vmul.f32 %v5154_v9, %v2625_v32  ;;  %v2679_v62 = vsub.f32 1.0, %v2671_v35  ;;  %v2700_v29 = vmul.f32 %v2692_v19, %v5117_v48 }
 0xfca   : > { %v2680_v11 = vsub.f32 1.0, %v2672_v17  ;;  %v2619_v42 = vmul.f32 %v5166_v28, %v2611_v15  ;;  %v2519_v47 = vsel %vm2511_vm11, 1.0, %v4298_v61  ;;  %v2498_v9 = vmul.f32 0.5, %v5094_v31 }
 0xfcb   : > { %v2690_v26 = vmul.f32 %v2682_v38, %v2522_v43  ;;  %v2673_v46 = vmul.f32 %v4032_v45, %v2633_v44  ;;  %v2521_v2 = vsel %vm2513_vm12, 1.0, %v4298_v61  ;;  %v2702_v12 = vmul.f32 %v2694_v4, %v5119_v49 }
 0xfcc   : > { %v2688_v25 = vmul.f32 %v2680_v11, %v2520_v21  ;;  %v2627_v20 = vadd.f32 0.2548296, %v2619_v42  ;;  %v2693_v57 = vadd.f32 1.0, %v2685_v33  ;;  %v2687_v48 = vmul.f32 %v2679_v62, %v2519_v47 }
 0xfcd   : > { %v2698_v52 = vadd.f32 1.0, %v2690_v26  ;;  %v2681_v53 = vsub.f32 1.0, %v2673_v46  ;;  %v2493_v56 = vmul.f32 0.5, %v5071_v6  ;;  %v2497_v5 = vmul.f32 0.5, %v5096_v3 }
 0xfce   : > { %v2696_v39 = vadd.f32 1.0, %v2688_v25  ;;  %v2635_v54 = vmul.f32 %v5166_v28, %v2627_v20  ;;  %v4034_v36 = vpop.eup %4033  ;;  %v2523_v28 = vsel %vm2515_vm13, 1.0, %v4298_v61  ;;  %v2695_v49 = vadd.f32 1.0, %v2687_v48  ;;  %v3445_v61 = vld [vmem:[%s800_s14] ss:$0 sm:$0xff] }
 0xfcf   : > { %v2706_v0 = vmul.f32 %v2698_v52, %v2498_v9  ;;  %v2689_v16 = vmul.f32 %v2681_v53, %v2521_v2  ;;  %v2701_v63 = vmul.f32 %v2693_v57, %v2493_v56  ;;  %v2499_v14 = vmul.f32 0.5, %v5106_v37 }
 0xfd0   : > { %v2704_v50 = vmul.f32 %v2696_v39, %v2496_v34  ;;  %v2675_v1 = vmul.f32 %v4034_v36, %v2635_v54  ;;  %v2703_v18 = vmul.f32 %v2695_v49, %v2495_v51 }
 0xfd1   : > { %v2710_v31 = vpack.c.bf16 %v2706_v0, %v2702_v12  ;;  %v2697_v8 = vadd.f32 1.0, %v2689_v16 }
 0xfd2   : > { %v2708_v58 = vpack.c.bf16 %v2704_v50, %v2700_v29  ;;  %v2683_v60 = vsub.f32 1.0, %v2675_v1 }
 0xfd3   : > { %v2705_v13 = vmul.f32 %v2697_v8, %v2497_v5 }
 0xfd4   : > { %v2691_v10 = vmul.f32 %v2683_v60, %v2523_v28 }
 0xfd5   : > { %v2709_v17 = vpack.c.bf16 %v2705_v13, %v2701_v63 }
 0xfd6   : > { %v2699_v59 = vadd.f32 1.0, %v2691_v10 }
 0xfd7   : > { %3007 = vmatprep.mubr.bf16.mxu1 %v2709_v17 }
 0xfd8   : > { %v2707_v6 = vmul.f32 %v2699_v59, %v2499_v14  ;;  %3008 = vmatmul.mubr.bf16.vlgmr.msra.gmra.mrb[48].mxu1 %v2708_v58 }
 0xfda   : > { %v2711_v3 = vpack.c.bf16 %v2707_v6, %v2703_v18 }
 0xfdc   : > { %3048 = vmatprep.mubr.bf16.mxu0 %v2711_v3 }
 0xfdd   : > { %3049 = vmatmul.mubr.bf16.vlgmr.msra.gmra.mrb[36].mxu0 %v2710_v31 }
0x10ab   : > { %v3555_v21 = vpop.f32.mrb[48].mxu1 }
0x10ac   : > { %v3556_v23 = vpop.f32.mrb[49].mxu1 }
0x10ad   : > { %v3557_v30 = vadd.f32 %v3556_v23, %v3555_v21  ;;  %v3558_v7 = vpop.f32.mrb[50].mxu1 }
0x10ae   : > { %v3559_v55 = vpop.f32.mrb[51].mxu1 }
0x10af   : > { %v3010_v40 = vadd.f32 %v3557_v30, %v3445_v61  ;;  %v3560_v24 = vadd.f32 %v3559_v55, %v3558_v7 }
0x10b0   : > { %v3577_v37 = vpop.f32.mrb[36].mxu0 }
0x10b1   : > { %v3578_v11 = vpop.f32.mrb[37].mxu0  ;;  %v3013_v32 = vadd.f32 %v3560_v24, %v3445_v61 }
0x10b2   : > { %v3579_v35 = vadd.f32 %v3578_v11, %v3577_v37  ;;  %v3580_v41 = vpop.f32.mrb[38].mxu0  ;;  %3062 = sbr.rel (%p3478_p11) target bundleno = 4283 (0x10bb), region = 112 }
0x10b3   : > { %v3581_v15 = vpop.f32.mrb[39].mxu0 }
0x10b4   : > { %v3051_v19 = vadd.f32 %v3579_v35, %v3010_v40  ;;  %v3582_v34 = vadd.f32 %v3581_v15, %v3580_v41 }
0x10b6   : > { %v3057_v25 = vadd.f32 %v3051_v19, %v4971_v22  ;;  %v3054_v43 = vadd.f32 %v3582_v34, %v3013_v32 }
0x10b8   : > { %v3058_v38 = vadd.f32 %v3054_v43, %v4973_v27  ;;  %3063 = vst [vmem:[#allocation11] sm:$0xff] (!%p3478_p11), %v3057_v25 }
0x10ba   : > { %3064 = vst [vmem:[#allocation11 + $0x8] sm:$0xff] %v3058_v38 }
0x10bb PF: > { %p3479_p10 = scmp.ne.s32.totalorder %s4269_s24, 1 }
0x10bc   : > { %3071 = vadd.xlane.f32.xlu0 (!%p3479_p10), %v3057_v25  ;;  %s5351_s14 = sld [smem:[#allocation33_spill]] (!%p3479_p10)  ;;  %s5352_s0 = sld [smem:[#allocation34_spill]] (!%p3479_p10) }
0x10bd   : > { %3068 = sbr.rel (%p3479_p10) target bundleno = 4600 (0x11f8), region = 116 }
0x10c0   : > { %3073 = vadd.xlane.f32.xlu0 (!%p3479_p10), %v3058_v38 }
0x10c2   : > { %v3480_v9 = vld [vmem:[%s5351_s14] ss:$0 sm:$0xff] (!%p3479_p10) }
0x10c3   : > { %v3481_v2 = vld [vmem:[%s5352_s0] ss:$0 sm:$0xff] (!%p3479_p10) }
0x1149   : > { %v3072_v44 = vpop.xlane.xlu0 %3071 }
0x114a   : > { %v3075_v42 = vmul.f32 0.0078125, %v3072_v44 }
0x114c   : > { %v3077_v45 = vsub.f32 %v3057_v25, %v3075_v42 }
0x114d   : > { %v3074_v4 = vpop.xlane.xlu0 %3073 }
0x114e   : > { %v3076_v33 = vmul.f32 0.0078125, %v3074_v4  ;;  %v3079_v22 = vmul.f32 %v3077_v45, %v3077_v45 }
0x1150   : > { %v3078_v39 = vsub.f32 %v3058_v38, %v3076_v33  ;;  %3081 = vadd.xlane.f32.xlu1 %v3079_v22 }
0x1152   : > { %v3080_v27 = vmul.f32 %v3078_v39, %v3078_v39 }
0x1154   : > { %3083 = vadd.xlane.f32.xlu1 %v3080_v27 }
0x11dd   : > { %v3082_v62 = vpop.xlane.xlu1 %3081 }
0x11de   : > { %v3085_v26 = vmul.f32 0.0078125, %v3082_v62 }
0x11e0   : > { %v3087_v46 = vadd.f32 1e-06, %v3085_v26 }
0x11e1   : > { %v3084_v20 = vpop.xlane.xlu1 %3083 }
0x11e2   : > { %4037 = vrsqrt.f32 %v3087_v46  ;;  %v3086_v29 = vmul.f32 0.0078125, %v3084_v20 }
0x11e4   : > { %v3088_v47 = vadd.f32 1e-06, %v3086_v29 }
0x11e6   : > { %4039 = vrsqrt.f32 %v3088_v47 }
0x11ec   : > { %v4038_v50 = vpop.eup %4037 }
0x11ed   : > { %v3091_v52 = vmul.f32 %v4038_v50, %v3077_v45 }
0x11ef   : > { %v3099_v53 = vmul.f32 %v3480_v9, %v3091_v52 }
0x11f0   : > { %v4040_v54 = vpop.eup %4039 }
0x11f1   : > { %v3107_v36 = vadd.f32 %v3481_v2, %v3099_v53  ;;  %v3092_v12 = vmul.f32 %v4040_v54, %v3078_v39 }
0x11f3   : > { %3109 = vst [vmem:[#allocation11] sm:$0xff] %v3107_v36  ;;  %v3100_v57 = vmul.f32 %v3480_v9, %v3092_v12 }
0x11f5   : > { %v3108_v58 = vadd.f32 %v3481_v2, %v3100_v57 }
0x11f7   : > { %3110 = vst [vmem:[#allocation11 + $0x8] sm:$0xff] %v3108_v58 }
0x11f8 PF: > { %p3759_p7 = scmp.eq.s32.totalorder %s4530_s23, 1  ;;  %s4299_s12 = smov [#allocation11]  }
0x11f9   : > { %s3120_s8 = sshll.u32 %s4299_s12, 4  ;;  %s3121_s8 = int_to_ptr.vmem [resolvable:$true] %s3120_s8 }
0x11fa   : > { %s4189_s4 = scalar_lea.vmem %s3121_s8, 256  ;;  %p4196_p2 = scmp.lt.s32.totalorder %s3121_s8, %s3121_s8 }
0x11fb   : > { %p4190_p8 = scmp.ne.s32.totalorder %s3121_s8, %s4189_s4  ;;  %p4197_p0 = scmp.lt.s32.totalorder %s4189_s4, %s4189_s4 }
0x11fd   : > { %p4191_p3 = pnand %p4190_p8, %p3759_p7  ;;  %p4198_p13 = por %p4197_p0, %p4196_p2 }
0x11ff   : > { %p4192_p9 = pneg %p4191_p3 }
0x1201   : > { %p4199_p1 = pnand %p4198_p13, %p4192_p9 }
0x1203   : > { %4202 = shalt.err (!%p4199_p1)
}
0x1204   : > { %s5353_s13 = sld [smem:[#allocation35_spill]] }
0x120a   : > { %s4203_s9 = scalar_lea.hbm %s5353_s13, 256 }
0x120b   : > { %p4204_p12 = scmp.ne.s32.totalorder %s5353_s13, %s4203_s9  ;;  %p4209_p5 = scmp.lt.u32.totalorder %s4203_s9, %s5353_s13 }
0x120d   : > { %p4205_p4 = pnand %p4204_p12, %p3759_p7 }
0x120f   : > { %p4206_p6 = pneg %p4205_p4 }
0x1211   : > { %p4211_p11 = pnand %p4209_p5, %p4206_p6 }
0x1213   : > { %4214 = shalt.err (!%p4211_p11)
}
0x1214   : > { %s4300_s29 = smov 128   ;;  %s4301_s25 = smov 8  }
0x1215   : > { %3736 = dma.vmem_to_hbm [thread:$0]  (%p3759_p7), %s3121_s8, 256, %s5353_s13, [#allocation4], %s4300_s29, %s4300_s29, %s4301_s25  }
0x1216   : > { %4252 = dma.done.wait (%p3759_p7), [#allocation4], 256  }
0x1217   : > { %4254 = vsyncadd (%p3759_p7), [#allocation4], 4294967040 }
0x1218 PF: > { %s5354_s26 = sld [smem:[#allocation19_spill]]  ;;  %s5355_s21 = sld [smem:[#allocation16_spill]] }
0x1219   : > { %s5356_s22 = sld [smem:[#allocation17_spill]]  ;;  %s5357_s23 = sld [smem:[#allocation21_spill]] }
0x121a   : > { %s5358_s24 = sld [smem:[#allocation18_spill]]  ;;  %s5359_s25 = sld [smem:[#allocation20_spill]] }
0x121e   : > { %s34_s26 = sadd.s32 1, %s5354_s26  }
0x121f   : > { %p31_p10 = scmp.ge.s32.totalorder %s34_s26, 4  }
0x1221   :  { %33 = sbr.rel (!%p31_p10) target bundleno = 23 (0x17), region = 199 }
0x1228   :  { %3136 = vsyncpa [#allocation3], 1 }
0x1229   :  { %3138 = vsyncpa [#allocation3 + $0x1], 1 }
0x122a   :  { %3139 = vsyncpa [#allocation6], 1 }
0x122b   :  { %3141 = vsyncpa [#allocation6 + $0x1], 1 }
0x122c   :  { %3142 = vsyncpa [#allocation9], 1 }
0x122d   :  { %3144 = vsyncpa [#allocation9 + $0x1], 1 }
0x122e   :  { %3145 = vsyncpa [#allocation4], 1 }
0x122f   :  { %3147 = vsyncpa [#allocation4 + $0x1], 1 }

</bundles_post_ra>
